<compile_context>
chip_gen: v6e
topology: v6e:2x2x1
jax: 0.10.0
libtpu: 0.0.40
codegen_flags: <defaults>
</compile_context>

<pallas_src>
import math

import jax
import jax.numpy as jnp
from jax.experimental import pallas as pl
from jax.experimental.pallas import tpu as pltpu

_NEG = float(jnp.finfo(jnp.float32).min)


def _fast_recip(x):
    # EUP reciprocal estimate + one Newton-Raphson step: ~f32 accurate while
    # keeping the estimate on the (otherwise idle) EUP slot.
    r = pl.reciprocal(x, approx=True)
    return r * (2.0 - x * r)


def _make_kernel(nb, num_heads, L, S, S_pad, head_dim, embed_dim,
                 tanh_clipping, has_mask):
    H, D, E = num_heads, head_dim, embed_dim
    inv_sqrt_d = 1.0 / math.sqrt(D)
    inv_sqrt_e = 1.0 / math.sqrt(E)

    def kernel(*refs):
        if has_mask:
            q_ref, kt_ref, vt_ref, lkw_ref, blk_ref, mask_ref, out_ref = refs
        else:
            q_ref, kt_ref, vt_ref, lkw_ref, blk_ref, out_ref = refs

        q = q_ref[...]       # (nb*H, L, D)
        kt = kt_ref[...]     # (nb*H, D, S_pad)   lane dim = S
        vt = vt_ref[...]     # (nb*H, D, S_pad)   lane dim = S

        # ---- multi-head attention over all nb*H heads (standard (L,D)x(D,S) MXU form) ----
        compat = jnp.einsum('bld,bds->bls', q, kt,
                            preferred_element_type=jnp.float32) * inv_sqrt_d
        compat = compat.reshape(nb, H, L, S_pad)      # leading-dim split: free

        if has_mask:
            m = mask_ref[...] != 0                    # int8 compare, no i32 unpack
        elif S_pad > S:
            # only the S-padding columns need masking when there is no user mask
            m = jax.lax.broadcasted_iota(jnp.int32, (1, L, S_pad), 2) >= S
        else:
            m = None
        if m is not None:
            compat = jnp.where(m[:, None, :, :], _NEG, compat)

        compat = compat - jnp.max(compat, axis=-1, keepdims=True)
        p = jnp.exp(compat)                           # f32 softmax
        p = p * _fast_recip(jnp.sum(p, axis=-1, keepdims=True))
        p = p.reshape(nb * H, L, S_pad)

        # heads = softmax(compat) @ V, using the lane-dense V^T layout (contract over S)
        heads = jnp.einsum('bls,bds->bld', p.astype(vt.dtype), vt,
                           preferred_element_type=jnp.float32)   # (nb*H, L, D) f32

        # ---- merge heads -> (nb, L, E) so the logits matmul contracts over K = E ----
        heads4 = heads.reshape(nb, H, L, D)
        if H == 1:
            heads_m = heads4[:, 0]
        else:
            heads_m = jnp.concatenate([heads4[:, h] for h in range(H)], axis=-1)

        # glimpse Linear folded into logit_K (done in the wrapper):
        #   (heads @ W.T + b) . logit_K  ==  heads . (logit_K @ W) + logit_K . b
        lkw = lkw_ref[...]                            # (nb, S_pad, E), lane-dense in E
        logits = jnp.einsum('ble,bse->bls', heads_m.astype(lkw.dtype), lkw,
                            preferred_element_type=jnp.float32)  # (nb, L, S_pad)
        logits = (logits + blk_ref[...]) * inv_sqrt_e
        if tanh_clipping > 0:
            logits = jnp.tanh(logits) * tanh_clipping
        if m is not None:
            logits = jnp.where(m, _NEG, logits)

        # ---- log_softmax over S ----
        mx = jnp.max(logits, axis=-1, keepdims=True)
        lse = jnp.log(jnp.sum(jnp.exp(logits - mx), axis=-1, keepdims=True)) + mx
        out_ref[...] = (logits - lse).astype(out_ref.dtype)

    return kernel


def _tpu_params():
    """(vmem_capacity_bytes, num_tensorcores) with conservative fallbacks."""
    cap, n_tc = 64 * 2**20, 1                 # v7x-sized fallback
    try:
        info = pltpu.get_tpu_info()
        cap = int(getattr(info, "vmem_capacity_bytes", cap))
        for attr in ("num_tensorcores", "tensorcores_per_chip", "num_cores",
                     "core_count"):
            v = getattr(info, attr, None)
            if isinstance(v, int) and v > 0:
                n_tc = v
                break
    except Exception:
        pass
    if n_tc == 1:
        try:
            if "v7" in jax.devices()[0].device_kind.lower():
                n_tc = 2
        except Exception:
            pass
    return cap, n_tc


def _padded_bytes(shape, dtype):
    """Bytes a buffer occupies in VMEM after (sublane, lane) tile padding."""
    it = jnp.dtype(dtype).itemsize
    sub = max(8, 32 // it)                    # f32: 8, bf16: 16, int8: 32
    if len(shape) == 1:
        return (-(-int(shape[0]) // 128) * 128) * it
    lead = 1
    for d in shape[:-2]:
        lead *= int(d)
    s = -(-int(shape[-2]) // sub) * sub
    lane = -(-int(shape[-1]) // 128) * 128
    return lead * s * lane * it


def _bytes_per_batch_elem(H, L, D, S_pad, E, cdt, has_mask):
    f32 = jnp.float32
    io = (_padded_bytes((H, L, D), cdt)             # q heads
          + 2 * _padded_bytes((H, D, S_pad), cdt)   # K^T, V^T heads
          + _padded_bytes((1, S_pad, E), cdt)       # logit_K @ W
          + _padded_bytes((1, 1, S_pad), f32)       # logit_K . bias
          + _padded_bytes((1, L, S_pad), f32))      # output
    if has_mask:
        io += _padded_bytes((1, L, S_pad), jnp.int8)
    tmp = (3 * _padded_bytes((H, L, S_pad), f32)    # compat / p scratch
           + 2 * _padded_bytes((H, L, D), f32)      # heads (+ merge scratch)
           + 2 * _padded_bytes((1, L, E), f32)
           + 4 * _padded_bytes((1, L, S_pad), f32)) # logits / exp / out scratch
    return 2 * io + tmp                             # x2: double-buffered pipeline


def precompute_decoder_inputs(glimpse_K, glimpse_V, logit_K, W, bias, *,
                              num_heads=1, compute_dtype=jnp.bfloat16):
    """Query-independent preprocessing.  In a decode loop call this ONCE and
    pass the result via `precomputed=` to every attention_decoder step.

    Returns (kT, vT, lkW, blk):
      kT, vT : (N*H, D, S)  head-split, lane dim = S      (compute_dtype)
      lkW    : (N, S, E)    logit_K @ W, lane dim = E     (compute_dtype)
      blk    : (N, 1, S)    logit_K . bias                (f32)
    """
    S, N, E = glimpse_K.shape
    H = num_heads
    assert E % H == 0
    D = E // H
    f32 = jnp.float32

    def split_heads_t(x):                 # (S, N, E) -> (N*H, D, S)
        return jnp.transpose(x.reshape(S, N, H, D), (1, 2, 3, 0)).reshape(N * H, D, S)

    kT = split_heads_t(glimpse_K).astype(compute_dtype)
    vT = split_heads_t(glimpse_V).astype(compute_dtype)
    lk32 = logit_K.astype(f32)
    lkW = jnp.einsum('nso,oi->nsi', lk32, W.astype(f32)).astype(compute_dtype)
    blk = jnp.einsum('nse,e->ns', lk32, bias.astype(f32)).reshape(N, 1, S)
    return kT, vT, lkW, blk


def attention_decoder(query, glimpse_K, glimpse_V, logit_K, attn_mask, W, bias, *,
                      num_heads=1, tanh_clipping=10.0,
                      compute_dtype=jnp.bfloat16, block_batch=None,
                      precomputed=None):
    """query (L,N,E), glimpse_K/V (S,N,E), logit_K (N,S,E), attn_mask (N,L,S) bool or None.

    Returns log-probs (N, L, S), squeezed over L when L == 1 (like the module).
    If `precomputed` (from precompute_decoder_inputs, same compute_dtype) is
    given, the query-independent preprocessing is skipped.
    """
    L, N, E = query.shape
    S = glimpse_K.shape[0]
    assert E % num_heads == 0
    H, D = num_heads, E // num_heads
    f32 = jnp.float32
    has_mask = attn_mask is not None

    S_pad = max(128, -(-S // 128) * 128)      # lane-dense S for the big operands/output

    # ---- query-dependent glue (every call): head-split query ----
    q_b = jnp.transpose(query.reshape(L, N, H, D), (1, 2, 0, 3)).reshape(N * H, L, D)
    q_b = q_b.astype(compute_dtype)

    if precomputed is None:
        precomputed = precompute_decoder_inputs(
            glimpse_K, glimpse_V, logit_K, W, bias,
            num_heads=num_heads, compute_dtype=compute_dtype)
    kT, vT, lkW, blk = precomputed

    # ---- pad S -> S_pad (zeros; padded columns re-masked to -inf in-kernel) ----
    if S_pad > S:
        pad_s = S_pad - S
        kT = jnp.pad(kT, ((0, 0), (0, 0), (0, pad_s)))
        vT = jnp.pad(vT, ((0, 0), (0, 0), (0, pad_s)))
        lkW = jnp.pad(lkW, ((0, 0), (0, pad_s), (0, 0)))
        blk = jnp.pad(blk, ((0, 0), (0, 0), (0, pad_s)))
    if has_mask:
        mask_i8 = attn_mask.astype(jnp.int8)
        if S_pad > S:
            mask_i8 = jnp.pad(mask_i8, ((0, 0), (0, 0), (0, S_pad - S)),
                              constant_values=1)       # padded columns masked

    # ---- block-batch size from the tile-padded VMEM footprint ----
    cap, n_tc = _tpu_params()
    budget = min(int(cap * 0.65), 100 * 2**20)
    per_elem = _bytes_per_batch_elem(H, L, D, S_pad, E, compute_dtype, has_mask)
    if block_batch is None:
        nb = max(1, min(budget // max(per_elem, 1), N))
        if n_tc > 1 and N > 1:
            # megacore chips: aim for >=2 grid steps per TensorCore
            nb = min(nb, max(1, pl.cdiv(N, 2 * n_tc)))
    else:
        nb = max(1, min(int(block_batch), N))

    n_pad = pl.cdiv(N, nb) * nb

    def pad_lead(x, mult):
        extra = n_pad * mult - x.shape[0]
        return x if extra == 0 else jnp.pad(x, [(0, extra)] + [(0, 0)] * (x.ndim - 1))

    inputs = [pad_lead(q_b, H), pad_lead(kT, H), pad_lead(vT, H),
              pad_lead(lkW, 1), pad_lead(blk, 1)]
    in_specs = [
        pl.BlockSpec((nb * H, L, D), lambda n: (n, 0, 0)),        # q heads
        pl.BlockSpec((nb * H, D, S_pad), lambda n: (n, 0, 0)),    # K^T heads (lane=S)
        pl.BlockSpec((nb * H, D, S_pad), lambda n: (n, 0, 0)),    # V^T heads (lane=S)
        pl.BlockSpec((nb, S_pad, E), lambda n: (n, 0, 0)),        # logit_K @ W (lane=E)
        pl.BlockSpec((nb, 1, S_pad), lambda n: (n, 0, 0)),        # logit_K . bias
    ]
    if has_mask:
        inputs.append(pad_lead(mask_i8, 1))
        in_specs.append(pl.BlockSpec((nb, L, S_pad), lambda n: (n, 0, 0)))

    kernel = _make_kernel(nb, H, L, S, S_pad, D, E, tanh_clipping, has_mask)

    out = pl.pallas_call(
        kernel,
        out_shape=jax.ShapeDtypeStruct((n_pad, L, S_pad), f32),
        grid=(n_pad // nb,),
        in_specs=in_specs,
        out_specs=pl.BlockSpec((nb, L, S_pad), lambda n: (n, 0, 0)),
        compiler_params=pltpu.CompilerParams(
            dimension_semantics=("parallel",),
            vmem_limit_bytes=int(cap * 0.9),
        ),
    )(*inputs)

    out = out[:N, :, :S]
    if L == 1:                                # matches log_prob.squeeze(1)
        out = jnp.squeeze(out, axis=1)
    return out


def _reference(query, glimpse_K, glimpse_V, logit_K, attn_mask, W, bias,
               num_heads, tanh_clipping):
    """Pure-JAX reference mirroring the PyTorch forward exactly."""
    L, N, E = query.shape
    S = glimpse_K.shape[0]
    D = E // num_heads
    neg = jnp.finfo(jnp.float32).min

    gQ = query.reshape(L, N, num_heads, D).transpose(2, 1, 0, 3)      # (H,N,L,D)
    gK = glimpse_K.reshape(S, N, num_heads, D).transpose(2, 1, 0, 3)  # (H,N,S,D)
    gV = glimpse_V.reshape(S, N, num_heads, D).transpose(2, 1, 0, 3)  # (H,N,S,D)
    compat = jnp.einsum('hnld,hnsd->hnls', gQ, gK) / math.sqrt(D)
    if attn_mask is not None:
        compat = jnp.where(attn_mask[None], neg, compat)
    p = jax.nn.softmax(compat, axis=-1)
    heads = jnp.einsum('hnls,hnsd->hnld', p, gV)                      # (H,N,L,D)
    heads = heads.transpose(1, 2, 0, 3).reshape(N, L, E)
    glimpse = heads @ W.T + bias
    logits = jnp.einsum('nle,nse->nls', glimpse, logit_K) / math.sqrt(E)
    if tanh_clipping > 0:
        logits = jnp.tanh(logits) * tanh_clipping
    if attn_mask is not None:
        logits = jnp.where(attn_mask, neg, logits)
    log_prob = jax.nn.log_softmax(logits, axis=-1)
    if L == 1:
        log_prob = jnp.squeeze(log_prob, axis=1)
    return log_prob


if __name__ == "__main__":
    # Small deterministic shapes: L=4, N=6, S=8, E=32, heads=2
    L, N, S, E, H = 4, 6, 8, 32, 2
    key = jax.random.PRNGKey(0)
    kq, kk, kv, kl, kw, kb, km = jax.random.split(key, 7)

    query = jax.random.normal(kq, (L, N, E), jnp.float32)
    glimpse_K = jax.random.normal(kk, (S, N, E), jnp.float32)
    glimpse_V = jax.random.normal(kv, (S, N, E), jnp.float32)
    logit_K = jax.random.normal(kl, (N, S, E), jnp.float32)

    # deterministic glimpse_proj params (Linear(E, E, bias=True))
    W = jax.random.normal(kw, (E, E), jnp.float32) * (1.0 / math.sqrt(E))
    bias = jax.random.normal(kb, (E,), jnp.float32) * 0.01

    # bool attn_mask (N, L, S); keep column 0 unmasked so no row is fully masked
    attn_mask = jax.random.bernoulli(km, 0.25, (N, L, S))
    attn_mask = attn_mask.at[:, :, 0].set(False)

    # 1) f32 compute, masked, L > 1 — strict check against the pure-JAX reference
    out = jax.block_until_ready(attention_decoder(
        query, glimpse_K, glimpse_V, logit_K, attn_mask, W, bias,
        num_heads=H, tanh_clipping=10.0, compute_dtype=jnp.float32))
    ref = _reference(query, glimpse_K, glimpse_V, logit_K, attn_mask, W, bias, H, 10.0)
    assert out.shape == ref.shape
    assert jnp.allclose(out, ref, atol=2e-3, rtol=2e-3), (
        float(jnp.max(jnp.abs(out - ref))))

    # 2) f32, no mask (mask input + masking passes compiled out)
    out_nm = jax.block_until_ready(attention_decoder(
        query, glimpse_K, glimpse_V, logit_K, None, W, bias,
        num_heads=H, tanh_clipping=10.0, compute_dtype=jnp.float32))
    ref_nm = _reference(query, glimpse_K, glimpse_V, logit_K, None, W, bias, H, 10.0)
    assert jnp.allclose(out_nm, ref_nm, atol=2e-3, rtol=2e-3), (
        float(jnp.max(jnp.abs(out_nm - ref_nm))))

    # 3) L == 1 decode step with hoisted (query-independent) preprocessing
    pre32 = precompute_decoder_inputs(glimpse_K, glimpse_V, logit_K, W, bias,
                                      num_heads=H, compute_dtype=jnp.float32)
    q1 = query[:1]
    m1 = attn_mask[:, :1, :]
    out1 = jax.block_until_ready(attention_decoder(
        q1, glimpse_K, glimpse_V, logit_K, m1, W, bias,
        num_heads=H, tanh_clipping=10.0, compute_dtype=jnp.float32,
        precomputed=pre32))
    ref1 = _reference(q1, glimpse_K, glimpse_V, logit_K, m1, W, bias, H, 10.0)
    assert out1.shape == ref1.shape == (N, S)
    assert jnp.allclose(out1, ref1, atol=2e-3, rtol=2e-3), (
        float(jnp.max(jnp.abs(out1 - ref1))))

    # 4) default path (bf16 MXU operands) — looser tolerance: bf16 input rounding
    #    is amplified by the tanh_clipping*10 rescale at this toy scale; the f32
    #    runs above establish exact-semantics correctness.
    out_bf = jax.block_until_ready(attention_decoder(
        query, glimpse_K, glimpse_V, logit_K, attn_mask, W, bias,
        num_heads=H, tanh_clipping=10.0))
    assert out_bf.shape == ref.shape
    assert jnp.allclose(out_bf, ref, atol=0.5, rtol=0.1), (
        float(jnp.max(jnp.abs(out_bf - ref))))

    print("KERNEL_OK")
</pallas_src>

<mosaic_0001>
module attributes {stable_mosaic.version = 11 : i64} {
  func.func @kernel(%arg0: i32, %arg1: memref<12x4x16xf32, #tpu.memory_space<vmem>>, %arg2: memref<12x16x128xf32, #tpu.memory_space<vmem>>, %arg3: memref<12x16x128xf32, #tpu.memory_space<vmem>>, %arg4: memref<6x128x32xf32, #tpu.memory_space<vmem>>, %arg5: memref<6x1x128xf32, #tpu.memory_space<vmem>>, %arg6: memref<6x4x128xi8, #tpu.memory_space<vmem>>, %arg7: memref<6x4x128xf32, #tpu.memory_space<vmem>>) attributes {dimension_semantics = [#tpu.dimension_semantics<parallel>], iteration_bounds = array<i64: 1>, scalar_prefetch = 0 : i64, scratch_operands = 0 : i64, tpu.core_type = #tpu.core_type<tc>, window_params = [{transform_indices = @transform_0, window_bounds = array<i64: 12, 4, 16>}, {transform_indices = @transform_1, window_bounds = array<i64: 12, 16, 128>}, {transform_indices = @transform_2, window_bounds = array<i64: 12, 16, 128>}, {transform_indices = @transform_3, window_bounds = array<i64: 6, 128, 32>}, {transform_indices = @transform_4, window_bounds = array<i64: 6, 1, 128>}, {transform_indices = @transform_5, window_bounds = array<i64: 6, 4, 128>}, {transform_indices = @transform_6, window_bounds = array<i64: 6, 4, 128>}]} {
    %c0 = arith.constant 0 : index
    %c0_0 = arith.constant 0 : index
    %c0_1 = arith.constant 0 : index
    %0 = vector.load %arg1[%c0, %c0_0, %c0_1] : memref<12x4x16xf32, #tpu.memory_space<vmem>>, vector<12x4x16xf32>
    %c0_2 = arith.constant 0 : index
    %c0_3 = arith.constant 0 : index
    %c0_4 = arith.constant 0 : index
    %1 = vector.load %arg2[%c0_2, %c0_3, %c0_4] : memref<12x16x128xf32, #tpu.memory_space<vmem>>, vector<12x16x128xf32>
    %c0_5 = arith.constant 0 : index
    %c0_6 = arith.constant 0 : index
    %c0_7 = arith.constant 0 : index
    %2 = vector.load %arg3[%c0_5, %c0_6, %c0_7] : memref<12x16x128xf32, #tpu.memory_space<vmem>>, vector<12x16x128xf32>
    "tpu.trace_start"() <{level = 10 : i32, message = "bld,bds->bls"}> : () -> ()
    %cst = arith.constant dense<0.000000e+00> : vector<12x4x128xf32>
    %3 = tpu.matmul %0, %1, %cst {dimension_numbers = #tpu.dot_dimension_numbers<[2], [1], [1], [2], [0, 0, 0, 1, 1, 2], [0], [0]>} : vector<12x4x16xf32>, vector<12x16x128xf32>, vector<12x4x128xf32> -> vector<12x4x128xf32>
    "tpu.trace_stop"() : () -> ()
    %cst_8 = arith.constant 2.500000e-01 : f32
    %4 = vector.broadcast %cst_8 : f32 to vector<12x4x128xf32>
    %5 = arith.mulf %3, %4 : vector<12x4x128xf32>
    %6 = vector.shape_cast %5 : vector<12x4x128xf32> to vector<6x2x4x128xf32>
    %c0_9 = arith.constant 0 : index
    %c0_10 = arith.constant 0 : index
    %c0_11 = arith.constant 0 : index
    %7 = vector.load %arg6[%c0_9, %c0_10, %c0_11] : memref<6x4x128xi8, #tpu.memory_space<vmem>>, vector<6x4x128xi8>
    %c0_i8 = arith.constant 0 : i8
    %8 = vector.broadcast %c0_i8 : i8 to vector<6x4x128xi8>
    %9 = arith.cmpi ne, %7, %8 : vector<6x4x128xi8>
    %10 = vector.shape_cast %9 : vector<6x4x128xi1> to vector<6x1x4x128xi1>
    %cst_12 = arith.constant -3.40282347E+38 : f32
    %11 = vector.shape_cast %10 : vector<6x1x4x128xi1> to vector<6x1x4x128xi1>
    %12 = vector.broadcast %11 : vector<6x1x4x128xi1> to vector<6x2x4x128xi1>
    %13 = vector.broadcast %cst_12 : f32 to vector<6x2x4x128xf32>
    %14 = arith.select %12, %13, %6 : vector<6x2x4x128xi1>, vector<6x2x4x128xf32>
    %cst_13 = arith.constant dense<0xFF800000> : vector<6x2x4xf32>
    %15 = vector.multi_reduction <maximumf>, %14, %cst_13 [3] : vector<6x2x4x128xf32> to vector<6x2x4xf32>
    %16 = vector.shape_cast %15 : vector<6x2x4xf32> to vector<6x2x4x1xf32>
    %17 = vector.broadcast %16 : vector<6x2x4x1xf32> to vector<6x2x4x128xf32>
    %18 = arith.subf %14, %17 : vector<6x2x4x128xf32>
    %19 = math.exp %18 : vector<6x2x4x128xf32>
    %cst_14 = arith.constant dense<0.000000e+00> : vector<6x2x4xf32>
    %20 = vector.multi_reduction <add>, %19, %cst_14 [3] : vector<6x2x4x128xf32> to vector<6x2x4xf32>
    %21 = vector.shape_cast %20 : vector<6x2x4xf32> to vector<6x2x4x1xf32>
    %22 = tpu.reciprocal %21 {approx = true} : vector<6x2x4x1xf32> -> vector<6x2x4x1xf32>
    %23 = arith.mulf %21, %22 : vector<6x2x4x1xf32>
    %cst_15 = arith.constant 2.000000e+00 : f32
    %24 = vector.broadcast %cst_15 : f32 to vector<6x2x4x1xf32>
    %25 = arith.subf %24, %23 : vector<6x2x4x1xf32>
    %26 = arith.mulf %22, %25 : vector<6x2x4x1xf32>
    %27 = vector.broadcast %26 : vector<6x2x4x1xf32> to vector<6x2x4x128xf32>
    %28 = arith.mulf %19, %27 : vector<6x2x4x128xf32>
    %29 = vector.shape_cast %28 : vector<6x2x4x128xf32> to vector<12x4x128xf32>
    "tpu.trace_start"() <{level = 10 : i32, message = "bls,bds->bld"}> : () -> ()
    %cst_16 = arith.constant dense<0.000000e+00> : vector<12x4x16xf32>
    %30 = tpu.matmul %29, %2, %cst_16 {dimension_numbers = #tpu.dot_dimension_numbers<[2], [2], [1], [1], [0, 0, 0, 1, 1, 1], [0], [0]>} : vector<12x4x128xf32>, vector<12x16x128xf32>, vector<12x4x16xf32> -> vector<12x4x16xf32>
    "tpu.trace_stop"() : () -> ()
    %31 = vector.shape_cast %30 : vector<12x4x16xf32> to vector<6x2x4x16xf32>
    %32 = vector.extract_strided_slice %31 {offsets = [0, 0, 0, 0], sizes = [6, 1, 4, 16], strides = [1, 1, 1, 1]} : vector<6x2x4x16xf32> to vector<6x1x4x16xf32>
    %33 = vector.shape_cast %32 : vector<6x1x4x16xf32> to vector<6x4x16xf32>
    %34 = vector.extract_strided_slice %31 {offsets = [0, 1, 0, 0], sizes = [6, 1, 4, 16], strides = [1, 1, 1, 1]} : vector<6x2x4x16xf32> to vector<6x1x4x16xf32>
    %35 = vector.shape_cast %34 : vector<6x1x4x16xf32> to vector<6x4x16xf32>
    %36 = tpu.concatenate %33, %35 in 2 : vector<6x4x16xf32>, vector<6x4x16xf32> -> vector<6x4x32xf32>
    %c0_17 = arith.constant 0 : index
    %c0_18 = arith.constant 0 : index
    %c0_19 = arith.constant 0 : index
    %37 = vector.load %arg4[%c0_17, %c0_18, %c0_19] : memref<6x128x32xf32, #tpu.memory_space<vmem>>, vector<6x128x32xf32>
    "tpu.trace_start"() <{level = 10 : i32, message = "ble,bse->bls"}> : () -> ()
    %cst_20 = arith.constant dense<0.000000e+00> : vector<6x4x128xf32>
    %38 = tpu.matmul %36, %37, %cst_20 {dimension_numbers = #tpu.dot_dimension_numbers<[2], [2], [1], [1], [0, 0, 0, 1, 1, 1], [0], [0]>} : vector<6x4x32xf32>, vector<6x128x32xf32>, vector<6x4x128xf32> -> vector<6x4x128xf32>
    "tpu.trace_stop"() : () -> ()
    %c0_21 = arith.constant 0 : index
    %c0_22 = arith.constant 0 : index
    %c0_23 = arith.constant 0 : index
    %39 = vector.load %arg5[%c0_21, %c0_22, %c0_23] : memref<6x1x128xf32, #tpu.memory_space<vmem>>, vector<6x1x128xf32>
    %40 = vector.broadcast %39 : vector<6x1x128xf32> to vector<6x4x128xf32>
    %41 = arith.addf %38, %40 : vector<6x4x128xf32>
    %cst_24 = arith.constant 0.176776692 : f32
    %42 = vector.broadcast %cst_24 : f32 to vector<6x4x128xf32>
    %43 = arith.mulf %41, %42 : vector<6x4x128xf32>
    %44 = math.tanh %43 : vector<6x4x128xf32>
    %cst_25 = arith.constant 1.000000e+01 : f32
    %45 = vector.broadcast %cst_25 : f32 to vector<6x4x128xf32>
    %46 = arith.mulf %44, %45 : vector<6x4x128xf32>
    %cst_26 = arith.constant -3.40282347E+38 : f32
    %47 = vector.broadcast %cst_26 : f32 to vector<6x4x128xf32>
    %48 = arith.select %9, %47, %46 : vector<6x4x128xi1>, vector<6x4x128xf32>
    %cst_27 = arith.constant dense<0xFF800000> : vector<6x4xf32>
    %49 = vector.multi_reduction <maximumf>, %48, %cst_27 [2] : vector<6x4x128xf32> to vector<6x4xf32>
    %50 = vector.shape_cast %49 : vector<6x4xf32> to vector<6x4x1xf32>
    %51 = vector.broadcast %50 : vector<6x4x1xf32> to vector<6x4x128xf32>
    %52 = arith.subf %48, %51 : vector<6x4x128xf32>
    %53 = math.exp %52 : vector<6x4x128xf32>
    %cst_28 = arith.constant dense<0.000000e+00> : vector<6x4xf32>
    %54 = vector.multi_reduction <add>, %53, %cst_28 [2] : vector<6x4x128xf32> to vector<6x4xf32>
    %55 = vector.shape_cast %54 : vector<6x4xf32> to vector<6x4x1xf32>
    %56 = math.log %55 : vector<6x4x1xf32>
    %57 = arith.addf %56, %50 : vector<6x4x1xf32>
    %58 = vector.broadcast %57 : vector<6x4x1xf32> to vector<6x4x128xf32>
    %59 = arith.subf %48, %58 : vector<6x4x128xf32>
    %c0_29 = arith.constant 0 : index
    %c0_30 = arith.constant 0 : index
    %c0_31 = arith.constant 0 : index
    %60 = vector.load %arg7[%c0_29, %c0_30, %c0_31] : memref<6x4x128xf32, #tpu.memory_space<vmem>>, vector<6x4x128xf32>
    tpu.vector_store %arg7[%c0_29, %c0_30, %c0_31], %59 {strides = array<i32>} : memref<6x4x128xf32, #tpu.memory_space<vmem>>, vector<6x4x128xf32>,
    return
  }
  func.func @transform_0(%arg0: i32) -> (i32, i32, i32) {
    %c0_i32 = arith.constant 0 : i32
    %c0_i32_0 = arith.constant 0 : i32
    %c0_i32_1 = arith.constant 0 : i32
    return %arg0, %c0_i32, %c0_i32_0 : i32, i32, i32
  }
  func.func @transform_1(%arg0: i32) -> (i32, i32, i32) {
    %c0_i32 = arith.constant 0 : i32
    %c0_i32_0 = arith.constant 0 : i32
    %c0_i32_1 = arith.constant 0 : i32
    return %arg0, %c0_i32, %c0_i32_0 : i32, i32, i32
  }
  func.func @transform_2(%arg0: i32) -> (i32, i32, i32) {
    %c0_i32 = arith.constant 0 : i32
    %c0_i32_0 = arith.constant 0 : i32
    %c0_i32_1 = arith.constant 0 : i32
    return %arg0, %c0_i32, %c0_i32_0 : i32, i32, i32
  }
  func.func @transform_3(%arg0: i32) -> (i32, i32, i32) {
    %c0_i32 = arith.constant 0 : i32
    %c0_i32_0 = arith.constant 0 : i32
    %c0_i32_1 = arith.constant 0 : i32
    return %arg0, %c0_i32, %c0_i32_0 : i32, i32, i32
  }
  func.func @transform_4(%arg0: i32) -> (i32, i32, i32) {
    %c0_i32 = arith.constant 0 : i32
    %c0_i32_0 = arith.constant 0 : i32
    %c0_i32_1 = arith.constant 0 : i32
    return %arg0, %c0_i32, %c0_i32_0 : i32, i32, i32
  }
  func.func @transform_5(%arg0: i32) -> (i32, i32, i32) {
    %c0_i32 = arith.constant 0 : i32
    %c0_i32_0 = arith.constant 0 : i32
    %c0_i32_1 = arith.constant 0 : i32
    return %arg0, %c0_i32, %c0_i32_0 : i32, i32, i32
  }
  func.func @transform_6(%arg0: i32) -> (i32, i32, i32) {
    %c0_i32 = arith.constant 0 : i32
    %c0_i32_0 = arith.constant 0 : i32
    %c0_i32_1 = arith.constant 0 : i32
    return %arg0, %c0_i32, %c0_i32_0 : i32, i32, i32
  }
}

</mosaic_0001>

<bundles_post_ra>
// kernel: tpu_custom_call.1
= control target key start
LH: loop header
LB: loop body
LE: loop exit
PB: predicated region body
PF: predicated region fallthrough
CT: control target
= control target key end

     0   :  { %v3842_v2 = vmov 0.0   ;;  %vm86_vm0 = vcmask 130048   ;;  %vm3843_vm1 = vmmov 0   ;;  %s4933_s0 = inlined_call_operand.vmem [shape: f32[12,4,16], index: 0, kind: input, shape index: {}]   ;;  %s4934_s1 = inlined_call_operand.vmem [shape: f32[12,16,128], index: 1, kind: input, shape index: {}]   ;;  %s4935_s2 = inlined_call_operand.vmem [shape: f32[12,16,128], index: 2, kind: input, shape index: {}]   ;;  %s4936_s3 = inlined_call_operand.vmem [shape: f32[6,128,32], index: 3, kind: input, shape index: {}]   ;;  %s4937_s4 = inlined_call_operand.vmem [shape: f32[6,1,128], index: 4, kind: input, shape index: {}]   ;;  %s4938_s5 = inlined_call_operand.vmem [shape: s8[6,4,128], index: 5, kind: input, shape index: {}]   ;;  %s4939_s6 = inlined_call_operand.hbm [shape: f32[6,4,128], index: 6, kind: output, shape index: {}]  }
   0x1   :  { %v39_v0 = vld [vmem:[%s4934_s1 + $0x8] sm:$0xff]  ;;  %v41_v1 = vld [vmem:[%s4934_s1 + $0x18] sm:$0xff]  ;;  %3351 = vmatprep.subr.mxu0 %v3842_v2  ;;  %3358 = vmatprep.subr.mxu1 %v3842_v2  ;;  %v38_v3 = vld [vmem:[%s4934_s1] sm:$0xff] }
   0x2   :  { %3352 = vmatpush3.msra.mxu0 %v39_v0  ;;  %3359 = vmatpush3.msra.mxu1 %v41_v1  ;;  %v40_v4 = vld [vmem:[%s4934_s1 + $0x10] sm:$0xff]  ;;  %v26_v5 = vld [vmem:[%s4933_s0] sm:$0xf]  ;;  %v27_v6 = vld [vmem:[%s4933_s0 + $0x4] sm:$0xf] }
   0x3   :  { %3353 = vmatprep.subr.mxu0 %v3842_v2  ;;  %3360 = vmatprep.subr.mxu1 %v3842_v2  ;;  %v45_v7 = vld [vmem:[%s4934_s1 + $0x38] sm:$0xff]  ;;  %v43_v8 = vld [vmem:[%s4934_s1 + $0x28] sm:$0xff]  ;;  %v44_v9 = vld [vmem:[%s4934_s1 + $0x30] sm:$0xff] }
   0x4   :  { %3354 = vmatpush3.msra.mxu0 %v38_v3  ;;  %3355 = vmatprep.mubr.msk.f32.mxu0 %vm3843_vm1, %v3842_v2  ;;  %v29_v10 = vld [vmem:[%s4933_s0 + $0xc] sm:$0xf]  ;;  %v49_v11 = vld [vmem:[%s4934_s1 + $0x58] sm:$0xff]  ;;  %v42_v12 = vld [vmem:[%s4934_s1 + $0x20] sm:$0xff] }
   0x5   :  { %3361 = vmatpush3.msra.mxu1 %v40_v4  ;;  %3362 = vmatprep.mubr.msk.f32.mxu1 %vm3843_vm1, %v3842_v2  ;;  %v48_v13 = vld [vmem:[%s4934_s1 + $0x50] sm:$0xff]  ;;  %v28_v14 = vld [vmem:[%s4933_s0 + $0x8] sm:$0xf] }
   0x6   :  { %3356 = vmatmul.mubr.msk.f32.vlgmr.msra.gmra.mxu0 %vm86_vm0, %v26_v5  ;;  %3363 = vmatmul.mubr.msk.f32.vlgmr.msra.gmra.mxu1 %vm86_vm0, %v27_v6  ;;  %v31_v15 = vld [vmem:[%s4933_s0 + $0x14] sm:$0xf] }
   0x7   :  { %3372 = vmatprep.subr.mxu1 %v3842_v2  ;;  %3376 = vmatprep.mubr.msk.f32.mxu1 %vm3843_vm1, %v3842_v2 }
   0x8   :  { %3373 = vmatpush3.msra.mxu1 %v45_v7  ;;  %3365 = vmatprep.subr.mxu0 %v3842_v2 }
   0x9   :  { %3374 = vmatprep.subr.mxu1 %v3842_v2  ;;  %3366 = vmatpush3.msra.mxu0 %v43_v8 }
   0xa   :  { %3375 = vmatpush3.msra.mxu1 %v44_v9  ;;  %3367 = vmatprep.subr.mxu0 %v3842_v2 }
   0xb   :  { %3377 = vmatmul.mubr.msk.f32.vlgmr.msra.gmra.mxu1 %vm86_vm0, %v29_v10  ;;  %3386 = vmatprep.subr.mxu1 %v3842_v2 }
   0xc   :  { %3387 = vmatpush3.msra.mxu1 %v49_v11  ;;  %3368 = vmatpush3.msra.mxu0 %v42_v12 }
   0xd   :  { %11 = vsyncpa [#allocation3], 0  ;;  %3388 = vmatprep.subr.mxu1 %v3842_v2  ;;  %3369 = vmatprep.mubr.msk.f32.mxu0 %vm3843_vm1, %v3842_v2  ;;  %v53_v16 = vld [vmem:[%s4934_s1 + $0x78] sm:$0xff]  ;;  %v47_v17 = vld [vmem:[%s4934_s1 + $0x48] sm:$0xff]  ;;  %v3844_v39 = vmov 0   ;;  %vm1029_vm6 = vcmask 1043456  }
   0xe   :  { %3389 = vmatpush3.msra.mxu1 %v48_v13  ;;  %3390 = vmatprep.mubr.msk.f32.mxu1 %vm3843_vm1, %v3842_v2  ;;  %v52_v18 = vld [vmem:[%s4934_s1 + $0x70] sm:$0xff]  ;;  %v33_v19 = vld [vmem:[%s4933_s0 + $0x1c] sm:$0xf]  ;;  %v46_v20 = vld [vmem:[%s4934_s1 + $0x40] sm:$0xff]  ;;  %vm2206_vm15 = vcmask 261120   ;;  %s3845_s17 = smov 16  }
   0xf   :  { %3370 = vmatmul.mubr.msk.f32.vlgmr.msra.gmra.mxu0 %vm86_vm0, %v28_v14  ;;  %3391 = vmatmul.mubr.msk.f32.vlgmr.msra.gmra.mxu1 %vm86_vm0, %v31_v15  ;;  %v30_v21 = vld [vmem:[%s4933_s0 + $0x10] sm:$0xf]  ;;  %v57_v22 = vld [vmem:[%s4934_s1 + $0x98] sm:$0xff]  ;;  %v51_v23 = vld [vmem:[%s4934_s1 + $0x68] sm:$0xff] }
  0x10   :  { %3400 = vmatprep.subr.mxu1 %v3842_v2  ;;  %3404 = vmatprep.mubr.msk.f32.mxu1 %vm3843_vm1, %v3842_v2  ;;  %v56_v24 = vld [vmem:[%s4934_s1 + $0x90] sm:$0xff]  ;;  %v50_v25 = vld [vmem:[%s4934_s1 + $0x60] sm:$0xff]  ;;  %v32_v27 = vld [vmem:[%s4933_s0 + $0x18] sm:$0xf] }
  0x11   :  { %3401 = vmatpush3.msra.mxu1 %v53_v16  ;;  %3379 = vmatprep.subr.mxu0 %v3842_v2  ;;  %v35_v26 = vld [vmem:[%s4933_s0 + $0x24] sm:$0xf]  ;;  %v61_v28 = vld [vmem:[%s4934_s1 + $0xb8] sm:$0xff]  ;;  %v55_v29 = vld [vmem:[%s4934_s1 + $0x88] sm:$0xff] }
  0x12   :  { %3402 = vmatprep.subr.mxu1 %v3842_v2  ;;  %3380 = vmatpush3.msra.mxu0 %v47_v17  ;;  %v60_v30 = vld [vmem:[%s4934_s1 + $0xb0] sm:$0xff]  ;;  %v37_v31 = vld [vmem:[%s4933_s0 + $0x2c] sm:$0xf]  ;;  %v54_v32 = vld [vmem:[%s4934_s1 + $0x80] sm:$0xff] }
  0x13   :  { %3403 = vmatpush3.msra.mxu1 %v52_v18  ;;  %3381 = vmatprep.subr.mxu0 %v3842_v2  ;;  %v34_v33 = vld [vmem:[%s4933_s0 + $0x20] sm:$0xf]  ;;  %v59_v34 = vld [vmem:[%s4934_s1 + $0xa8] sm:$0xff]  ;;  %v3073_v5 = vld [vmem:[%s4937_s4 + $0x4] ss:$0 sm:$0xff] }
  0x14   :  { %3405 = vmatmul.mubr.msk.f32.vlgmr.msra.gmra.mxu1 %vm86_vm0, %v33_v19  ;;  %3382 = vmatpush3.msra.mxu0 %v46_v20  ;;  %v58_v35 = vld [vmem:[%s4934_s1 + $0xa0] sm:$0xff]  ;;  %v36_v36 = vld [vmem:[%s4933_s0 + $0x28] sm:$0xf] }
  0x15   :  { %3383 = vmatprep.mubr.msk.f32.mxu0 %vm3843_vm1, %v3842_v2  ;;  %3414 = vmatprep.subr.mxu1 %v3842_v2  ;;  %v975_v37 = vld [vmem:[%s4938_s5] sm:$0x1]  ;;  %v976_v38 = vld [vmem:[%s4938_s5 + $0x1] sm:$0x1]  ;;  %v977_v42 = vld [vmem:[%s4938_s5 + $0x2] sm:$0x1] }
  0x16   :  { %3384 = vmatmul.mubr.msk.f32.vlgmr.msra.gmra.mxu0 %vm86_vm0, %v30_v21  ;;  %3393 = vmatprep.subr.mxu0 %v3842_v2  ;;  %vm981_vm2 = vnez %v975_v37  ;;  %vm982_vm3 = vnez %v976_v38  ;;  %vm983_vm4 = vnez %v977_v42  ;;  %v978_v50 = vld [vmem:[%s4938_s5 + $0x3] sm:$0x1]  ;;  %v3071_v46 = vld [vmem:[%s4937_s4 + $0x2] ss:$0 sm:$0xff] }
  0x17   :  { %3415 = vmatpush3.msra.mxu1 %v57_v22  ;;  %3394 = vmatpush3.msra.mxu0 %v51_v23  ;;  %v987_v40 = vsel %vm981_vm2, 16843009, %v3844_v39  ;;  %v988_v43 = vsel %vm982_vm3, 16843009, %v3844_v39  ;;  %v989_v53 = vsel %vm983_vm4, 16843009, %v3844_v39  ;;  %vm984_vm7 = vnez %v978_v50 }
  0x18   :  { %3416 = vmatprep.subr.mxu1 %v3842_v2  ;;  %3395 = vmatprep.subr.mxu0 %v3842_v2  ;;  %v993_v41 = vunpack.c.0.s8 %v987_v40  ;;  %v994_v49 = vunpack.c.0.s8 %v988_v43  ;;  %v995_v60 = vunpack.c.0.s8 %v989_v53  ;;  %v990_v63 = vsel %vm984_vm7, 16843009, %v3844_v39 }
  0x19   :  { %3417 = vmatpush3.msra.mxu1 %v56_v24  ;;  %3418 = vmatprep.mubr.msk.f32.mxu1 %vm3843_vm1, %v3842_v2  ;;  %v996_v8 = vunpack.c.0.s8 %v990_v63 }
  0x1a   :  { %3396 = vmatpush3.msra.mxu0 %v50_v25  ;;  %3397 = vmatprep.mubr.msk.f32.mxu0 %vm3843_vm1, %v3842_v2  ;;  %vm4069_vm5 = vcmp.ne.s32.totalorder %v993_v41, 0  ;;  %vm4083_vm8 = vcmp.ne.s32.totalorder %v994_v49, 0  ;;  %vm4091_vm9 = vcmp.ne.s32.totalorder %v995_v60, 0  ;;  %v979_v41 = vld [vmem:[%s4938_s5 + $0x4] sm:$0x1] }
  0x1b   :  { %3419 = vmatmul.mubr.msk.f32.vlgmr.msra.gmra.mxu1 %vm86_vm0, %v35_v26  ;;  %3398 = vmatmul.mubr.msk.f32.vlgmr.msra.gmra.mxu0 %vm86_vm0, %v32_v27  ;;  %vm4101_vm10 = vcmp.ne.s32.totalorder %v996_v8, 0  ;;  %vm985_vm11 = vnez %v979_v41 }
  0x1c   :  { %3428 = vmatprep.subr.mxu1 %v3842_v2  ;;  %3432 = vmatprep.mubr.msk.f32.mxu1 %vm3843_vm1, %v3842_v2  ;;  %v991_v50 = vsel %vm985_vm11, 16843009, %v3844_v39 }
  0x1d   :  { %3429 = vmatpush3.msra.mxu1 %v61_v28  ;;  %3407 = vmatprep.subr.mxu0 %v3842_v2 }
  0x1e   :  { %3430 = vmatprep.subr.mxu1 %v3842_v2  ;;  %3408 = vmatpush3.msra.mxu0 %v55_v29 }
  0x1f   :  { %3431 = vmatpush3.msra.mxu1 %v60_v30  ;;  %3409 = vmatprep.subr.mxu0 %v3842_v2 }
  0x20   :  { %3433 = vmatmul.mubr.msk.f32.vlgmr.msra.gmra.mxu1 %vm86_vm0, %v37_v31  ;;  %3410 = vmatpush3.msra.mxu0 %v54_v32 }
  0x21   :  { %3411 = vmatprep.mubr.msk.f32.mxu0 %vm3843_vm1, %v3842_v2  ;;  %3421 = vmatprep.subr.mxu0 %v3842_v2 }
  0x22   :  { %3412 = vmatmul.mubr.msk.f32.vlgmr.msra.gmra.mxu0 %vm86_vm0, %v34_v33  ;;  %3442 = vmatprep.subr.mxu1 %v3842_v2 }
  0x23   :  { %3422 = vmatpush3.msra.mxu0 %v59_v34  ;;  %3425 = vmatprep.mubr.msk.f32.mxu0 %vm3843_vm1, %v3842_v2 }
  0x24   :  { %3423 = vmatprep.subr.mxu0 %v3842_v2  ;;  %3446 = vmatprep.mubr.msk.f32.mxu1 %vm3843_vm1, %v3842_v2 }
  0x25   :  { %3424 = vmatpush3.msra.mxu0 %v58_v35 }
  0x26   :  { %3426 = vmatmul.mubr.msk.f32.vlgmr.msra.gmra.mxu0 %vm86_vm0, %v36_v36  ;;  %3435 = vmatprep.subr.mxu0 %v3842_v2 }
  0x27   :  { %3439 = vmatprep.mubr.msk.f32.mxu0 %vm3843_vm1, %v3842_v2 }
  0xc6   :  { %v156_v44 = vpop.f32.mrf.mxu0  ;;  %v229_v45 = vpop.f32.mrf.mxu1 }
  0xc7   :  { %v963_v47 = vmul.f32 0.25, %v156_v44  ;;  %v964_v48 = vmul.f32 0.25, %v229_v45 }
  0xc8   :  { %v3364_v51 = vpop.f32.mrf.mxu1  ;;  %v3357_v52 = vpop.f32.mrf.mxu0 }
  0xc9   :  { %v1018_v54 = vsel %vm4069_vm5, -3.4028235e+38, %v964_v48  ;;  %v1017_v55 = vsel %vm4069_vm5, -3.4028235e+38, %v963_v47  ;;  %v980_v48 = vld [vmem:[%s4938_s5 + $0x5] sm:$0x1] }
  0xca   :  { %v1033_v56 = vsel %vm1029_vm6, %v1018_v54, -inf  ;;  %v1030_v57 = vsel %vm1029_vm6, %v1017_v55, -inf  ;;  %vm986_vm12 = vnez %v980_v48 }
  0xcb   :  { %v375_v58 = vpop.f32.mrf.mxu1  ;;  %1034 = vmax.xlane.f32.xlu0 %v1033_v56  ;;  %1031 = vmax.xlane.f32.xlu1 %v1030_v57  ;;  %v997_v56 = vunpack.c.0.s8 %v991_v50  ;;  %v992_v57 = vsel %vm986_vm12, 16843009, %v3844_v39 }
  0xcc   :  { %v966_v61 = vmul.f32 0.25, %v375_v58  ;;  %v998_v39 = vunpack.c.0.s8 %v992_v57 }
  0xcd   :  { %v3378_v62 = vpop.f32.mrf.mxu1  ;;  %vm4126_vm13 = vcmp.ne.s32.totalorder %v997_v56, 0 }
  0xce   :  { %v1020_v0 = vsel %vm4083_vm8, -3.4028235e+38, %v966_v61  ;;  %vm4140_vm14 = vcmp.ne.s32.totalorder %v998_v39, 0  ;;  %v69_v39 = vld [vmem:[%s4935_s2 + $0x38] sm:$0xff] }
  0xcf   :  { %v302_v1 = vpop.f32.mrf.mxu0  ;;  %v521_v3 = vpop.f32.mrf.mxu1  ;;  %v1039_v4 = vsel %vm1029_vm6, %v1020_v0, -inf }
  0xd0   :  { %v965_v6 = vmul.f32 0.25, %v302_v1  ;;  %v968_v7 = vmul.f32 0.25, %v521_v3  ;;  %1040 = vmax.xlane.f32.xlu0 %v1039_v4 }
  0xd1   :  { %v3392_v9 = vpop.f32.mrf.mxu1  ;;  %v3371_v10 = vpop.f32.mrf.mxu0 }
  0xd2   :  { %v1022_v11 = vsel %vm4091_vm9, -3.4028235e+38, %v968_v7  ;;  %v1019_v12 = vsel %vm4083_vm8, -3.4028235e+38, %v965_v6 }
  0xd3   :  { %v1045_v13 = vsel %vm1029_vm6, %v1022_v11, -inf  ;;  %v1036_v14 = vsel %vm1029_vm6, %v1019_v12, -inf }
  0xd4   :  { %v667_v15 = vpop.f32.mrf.mxu1  ;;  %1046 = vmax.xlane.f32.xlu1 %v1045_v13  ;;  %1037 = vmax.xlane.f32.xlu0 %v1036_v14 }
  0xd5   :  { %v970_v17 = vmul.f32 0.25, %v667_v15 }
  0xd6   :  { %v3406_v18 = vpop.f32.mrf.mxu1  ;;  %v448_v21 = vpop.f32.mrf.mxu0 }
  0xd7   :  { %v1024_v19 = vsel %vm4101_vm10, -3.4028235e+38, %v970_v17  ;;  %v967_v52 = vmul.f32 0.25, %v448_v21 }
  0xd8   :  { %v1051_v20 = vsel %vm1029_vm6, %v1024_v19, -inf  ;;  %v3385_v23 = vpop.f32.mrf.mxu0 }
  0xd9   :  { %1052 = vmax.xlane.f32.xlu1 %v1051_v20  ;;  %v4122_v61 = vsel %vm4091_vm9, -3.4028235e+38, %v967_v52 }
  0xda   :  { %v1042_v3 = vsel %vm1029_vm6, %v4122_v61, -inf }
  0xdb   :  { %v813_v22 = vpop.f32.mrf.mxu1  ;;  %v594_v25 = vpop.f32.mrf.mxu0 }
  0xdc   :  { %v969_v60 = vmul.f32 0.25, %v594_v25  ;;  %v972_v63 = vmul.f32 0.25, %v813_v22 }
  0xdd   :  { %v3420_v24 = vpop.f32.mrf.mxu1  ;;  %v3399_v27 = vpop.f32.mrf.mxu0 }
  0xde   :  { %v1023_v4 = vsel %vm4101_vm10, -3.4028235e+38, %v969_v60  ;;  %v1026_v8 = vsel %vm4126_vm13, -3.4028235e+38, %v972_v63 }
  0xe0   :  { %v959_v26 = vpop.f32.mrf.mxu1 }
  0xe1   :  { %v974_v7 = vmul.f32 0.25, %v959_v26 }
  0xe2   :  { %v3434_v28 = vpop.f32.mrf.mxu1  ;;  %v740_v29 = vpop.f32.mrf.mxu0 }
  0xe3   :  { %v1028_v13 = vsel %vm4140_vm14, -3.4028235e+38, %v974_v7  ;;  %v971_v17 = vmul.f32 0.25, %v740_v29 }
  0xe4   :  { %v3413_v30 = vpop.f32.mrf.mxu0  ;;  %v1063_v15 = vsel %vm1029_vm6, %v1028_v13, -inf }
  0xe5   :  { %v4159_v21 = vsel %vm4126_vm13, -3.4028235e+38, %v971_v17  ;;  %v65_v30 = vld [vmem:[%s4935_s2 + $0x18] sm:$0xff] }
  0xe6   :  { %v4108_v31 = vpop.f32.mrf.mxu0  ;;  %v1054_v26 = vsel %vm1029_vm6, %v4159_v21, -inf  ;;  %3443 = vmatpush3.xpose.msra.mxu1 %v65_v30 }
  0xe7   :  { %v973_v23 = vmul.f32 0.25, %v4108_v31  ;;  %3444 = vmatprep.subr.mxu1 %v3842_v2  ;;  %v64_v31 = vld [vmem:[%s4935_s2 + $0x10] sm:$0xff] }
  0xe8   :  { %v3427_v32 = vpop.f32.mrf.mxu0 }
  0xe9   :  { %v4172_v27 = vsel %vm4140_vm14, -3.4028235e+38, %v973_v23  ;;  %v63_v32 = vld [vmem:[%s4935_s2 + $0x8] sm:$0xff] }
  0xea   :  { %v1060_v29 = vsel %vm1029_vm6, %v4172_v27, -inf  ;;  %3445 = vmatpush3.xpose.msra.mxu1 %v64_v31  ;;  %3436 = vmatpush3.xpose.msra.mxu0 %v63_v32 }
  0xeb   :  { %3456 = vmatprep.subr.mxu1 %v3842_v2  ;;  %3437 = vmatprep.subr.mxu0 %v3842_v2 }
 0x154   :  { %v1035_v33 = vpop.xlane.xlu0 %1034  ;;  %v1032_v36 = vpop.xlane.xlu1 %1031 }
 0x155   :  { %v1067_v34 = vsub.f32 %v1018_v54, %v1035_v33  ;;  %v1066_v40 = vsub.f32 %v1017_v55, %v1032_v36  ;;  %v62_v33 = vld [vmem:[%s4935_s2] sm:$0xff] }
 0x156   :  { %3438 = vmatpush3.xpose.msra.mxu0 %v62_v33 }
 0x157   :  { %v1080_v35 = vmul.f32 1.442695, %v1067_v34  ;;  %v1078_v45 = vmul.f32 1.442695, %v1066_v40  ;;  %3449 = vmatprep.subr.mxu0 %v3842_v2 }
 0x159   :  { %3736 = vpow2.f32 %v1080_v35  ;;  %v1041_v37 = vpop.xlane.xlu0 %1040 }
 0x15a   :  { %v1069_v38 = vsub.f32 %v1020_v0, %v1041_v37 }
 0x15c   :  { %v1084_v42 = vmul.f32 1.442695, %v1069_v38 }
 0x15d   :  { %v1047_v43 = vpop.xlane.xlu1 %1046  ;;  %v1038_v44 = vpop.xlane.xlu0 %1037 }
 0x15e   :  { %3738 = vpow2.f32 %v1084_v42  ;;  %v1068_v47 = vsub.f32 %v1019_v12, %v1038_v44  ;;  %v1071_v49 = vsub.f32 %v1022_v11, %v1047_v43  ;;  %v1048_v11 = vsel %vm1029_vm6, %v1023_v4, -inf }
 0x15f   :  { %3740 = vpow2.f32 %v1078_v45  ;;  %v1057_v12 = vsel %vm1029_vm6, %v1026_v8, -inf }
 0x160   :  { %v1082_v53 = vmul.f32 1.442695, %v1068_v47  ;;  %v1088_v54 = vmul.f32 1.442695, %v1071_v49 }
 0x162   :  { %v1053_v51 = vpop.xlane.xlu1 %1052  ;;  %3742 = vpow2.f32 %v1082_v53 }
 0x163   :  { %v1073_v55 = vsub.f32 %v1024_v19, %v1053_v51  ;;  %3744 = vpow2.f32 %v1088_v54 }
 0x165   :  { %v1092_v0 = vmul.f32 1.442695, %v1073_v55 }
 0x166   :  { %v4118_v58 = vpop.eup %3736 }
 0x167   :  { %v1105_v62 = vsel %vm1029_vm6, %v4118_v58, 0.0  ;;  %3746 = vpow2.f32 %v1092_v0 }
 0x168   :  { %1106 = vadd.xlane.f32.xlu0 %v1105_v62 }
 0x16b   :  { %v4134_v6 = vpop.eup %3738 }
 0x16c   :  { %v1111_v9 = vsel %vm1029_vm6, %v4134_v6, 0.0  ;;  %1043 = vmax.xlane.f32.xlu0 %v1042_v3  ;;  %v4148_v14 = vpop.eup %3740 }
 0x16d   :  { %1112 = vadd.xlane.f32.xlu1 %v1111_v9  ;;  %v1102_v18 = vsel %vm1029_vm6, %v4148_v14, 0.0 }
 0x16f   :  { %v4153_v19 = vpop.eup %3742 }
 0x170   :  { %1049 = vmax.xlane.f32.xlu0 %v1048_v11  ;;  %v4155_v20 = vpop.eup %3744  ;;  %v1108_v22 = vsel %vm1029_vm6, %v4153_v19, 0.0  ;;  %v68_v11 = vld [vmem:[%s4935_s2 + $0x30] sm:$0xff] }
 0x171   :  { %1058 = vmax.xlane.f32.xlu1 %v1057_v12  ;;  %v1117_v24 = vsel %vm1029_vm6, %v4155_v20, 0.0 }
 0x174   :  { %1103 = vadd.xlane.f32.xlu0 %v1102_v18  ;;  %v4166_v25 = vpop.eup %3746 }
 0x175   :  { %1064 = vmax.xlane.f32.xlu1 %v1063_v15  ;;  %v1123_v28 = vsel %vm1029_vm6, %v4166_v25, 0.0 }
 0x178   :  { %1109 = vadd.xlane.f32.xlu0 %v1108_v22 }
 0x179   :  { %1118 = vadd.xlane.f32.xlu1 %v1117_v24 }
 0x17c   :  { %1055 = vmax.xlane.f32.xlu0 %v1054_v26  ;;  %v73_v26 = vld [vmem:[%s4935_s2 + $0x58] sm:$0xff] }
 0x17d   :  { %1124 = vadd.xlane.f32.xlu1 %v1123_v28 }
 0x181   :  { %1061 = vmax.xlane.f32.xlu1 %v1060_v29 }
 0x1f1   :  { %v1107_v34 = vpop.xlane.xlu0 %1106 }
 0x1f2   :  { %3748 = vrcp.f32 %v1107_v34 }
 0x1f5   :  { %v1044_v35 = vpop.xlane.xlu0 %1043 }
 0x1f6   :  { %v1113_v36 = vpop.xlane.xlu1 %1112  ;;  %v1070_v37 = vsub.f32 %v4122_v61, %v1044_v35 }
 0x1f7   :  { %3750 = vrcp.f32 %v1113_v36 }
 0x1f8   :  { %v1086_v38 = vmul.f32 1.442695, %v1070_v37 }
 0x1f9   :  { %v1050_v40 = vpop.xlane.xlu0 %1049 }
 0x1fa   :  { %3752 = vpow2.f32 %v1086_v38  ;;  %v1059_v41 = vpop.xlane.xlu1 %1058  ;;  %v1072_v42 = vsub.f32 %v1023_v4, %v1050_v40  ;;  %v67_v40 = vld [vmem:[%s4935_s2 + $0x28] sm:$0xff] }
 0x1fb   :  { %v1075_v43 = vsub.f32 %v1026_v8, %v1059_v41 }
 0x1fc   :  { %v1090_v44 = vmul.f32 1.442695, %v1072_v42 }
 0x1fd   :  { %v1096_v45 = vmul.f32 1.442695, %v1075_v43  ;;  %v1104_v47 = vpop.xlane.xlu0 %1103 }
 0x1fe   :  { %3754 = vpow2.f32 %v1090_v44  ;;  %v1065_v48 = vpop.xlane.xlu1 %1064 }
 0x1ff   :  { %v3749_v49 = vpop.eup %3748  ;;  %3756 = vpow2.f32 %v1096_v45  ;;  %v1077_v50 = vsub.f32 %v1028_v13, %v1065_v48  ;;  %v77_v48 = vld [vmem:[%s4935_s2 + $0x78] sm:$0xff] }
 0x200   :  { %v1151_v51 = vmul.f32 %v3749_v49, %v1107_v34  ;;  %3758 = vrcp.f32 %v1104_v47  ;;  %v72_v34 = vld [vmem:[%s4935_s2 + $0x50] sm:$0xff] }
 0x201   :  { %v1100_v52 = vmul.f32 1.442695, %v1077_v50  ;;  %v1110_v53 = vpop.xlane.xlu0 %1109 }
 0x202   :  { %v1163_v54 = vsub.f32 2.0, %v1151_v51  ;;  %v1119_v55 = vpop.xlane.xlu1 %1118  ;;  %3760 = vrcp.f32 %v1110_v53 }
 0x203   :  { %3762 = vpow2.f32 %v1100_v52  ;;  %v76_v52 = vld [vmem:[%s4935_s2 + $0x70] sm:$0xff] }
 0x204   :  { %v3751_v56 = vpop.eup %3750  ;;  %v1175_v57 = vmul.f32 %v3749_v49, %v1163_v54  ;;  %3764 = vrcp.f32 %v1119_v55  ;;  %v71_v54 = vld [vmem:[%s4935_s2 + $0x48] sm:$0xff] }
 0x205   :  { %v1153_v60 = vmul.f32 %v3751_v56, %v1113_v36  ;;  %v1056_v61 = vpop.xlane.xlu0 %1055 }
 0x206   :  { %v1187_v62 = vmul.f32 %v4118_v58, %v1175_v57  ;;  %v1125_v63 = vpop.xlane.xlu1 %1124  ;;  %v1074_v0 = vsub.f32 %v4159_v21, %v1056_v61 }
 0x207   :  { %v4200_v3 = vpop.eup %3752  ;;  %v1165_v4 = vsub.f32 2.0, %v1153_v60  ;;  %3766 = vrcp.f32 %v1125_v63 }
 0x208   :  { %v1094_v7 = vmul.f32 1.442695, %v1074_v0  ;;  %3447 = vmatmul.mubr.f32.vlgmr.msra.gmra.mxu1 %v1187_v62  ;;  %v1114_v8 = vsel %vm1029_vm6, %v4200_v3, 0.0 }
 0x209   :  { %3457 = vmatpush3.xpose.msra.mxu1 %v69_v39  ;;  %1115 = vadd.xlane.f32.xlu0 %v1114_v8  ;;  %v1177_v9 = vmul.f32 %v3751_v56, %v1165_v4  ;;  %v80_v56 = vld [vmem:[%s4935_s2 + $0x90] sm:$0xff] }
 0x20a   :  { %3768 = vpow2.f32 %v1094_v7  ;;  %v1062_v58 = vpop.xlane.xlu1 %1061  ;;  %3458 = vmatprep.subr.mxu1 %v3842_v2  ;;  %3460 = vmatprep.mubr.msk.f32.mxu1 %vm3843_vm1, %v3842_v2 }
 0x20b   :  { %v4210_v12 = vpop.eup %3754  ;;  %v1076_v13 = vsub.f32 %v4172_v27, %v1062_v58  ;;  %v1189_v23 = vmul.f32 %v4134_v6, %v1177_v9 }
 0x20c   :  { %v4213_v15 = vpop.eup %3756  ;;  %v1120_v17 = vsel %vm1029_vm6, %v4210_v12, 0.0 }
 0x20d   :  { %v3759_v18 = vpop.eup %3758  ;;  %v1098_v21 = vmul.f32 1.442695, %v1076_v13  ;;  %3459 = vmatpush3.xpose.msra.mxu1 %v68_v11  ;;  %1121 = vadd.xlane.f32.xlu0 %v1120_v17  ;;  %v1129_v22 = vsel %vm1029_vm6, %v4213_v15, 0.0 }
 0x20e   :  { %v1150_v24 = vmul.f32 %v3759_v18, %v1104_v47  ;;  %1130 = vadd.xlane.f32.xlu1 %v1129_v22  ;;  %3470 = vmatprep.subr.mxu1 %v3842_v2  ;;  %v66_v47 = vld [vmem:[%s4935_s2 + $0x20] sm:$0xff] }
 0x20f   :  { %v3761_v27 = vpop.eup %3760  ;;  %3770 = vpow2.f32 %v1098_v21  ;;  %v75_v21 = vld [vmem:[%s4935_s2 + $0x68] sm:$0xff] }
 0x210   :  { %v4224_v28 = vpop.eup %3762  ;;  %v1162_v29 = vsub.f32 2.0, %v1150_v24  ;;  %v1152_v30 = vmul.f32 %v3761_v27, %v1110_v53  ;;  %3461 = vmatmul.mubr.f32.vlgmr.msra.gmra.mxu1 %v1189_v23 }
 0x211   :  { %v3765_v31 = vpop.eup %3764  ;;  %3471 = vmatpush3.xpose.msra.mxu1 %v73_v26  ;;  %v1135_v6 = vsel %vm1029_vm6, %v4224_v28, 0.0  ;;  %3474 = vmatprep.mubr.msk.f32.mxu1 %vm3843_vm1, %v3842_v2 }
 0x212   :  { %v1174_v32 = vmul.f32 %v3759_v18, %v1162_v29  ;;  %v1155_v33 = vmul.f32 %v3765_v31, %v1119_v55  ;;  %1136 = vadd.xlane.f32.xlu1 %v1135_v6  ;;  %3472 = vmatprep.subr.mxu1 %v3842_v2  ;;  %v1164_v38 = vsub.f32 2.0, %v1152_v30  ;;  %v70_v55 = vld [vmem:[%s4935_s2 + $0x40] sm:$0xff] }
 0x214   :  { %v3767_v35 = vpop.eup %3766  ;;  %v1186_v36 = vmul.f32 %v4148_v14, %v1174_v32  ;;  %v1167_v37 = vsub.f32 2.0, %v1155_v33  ;;  %v1176_v44 = vmul.f32 %v3761_v27, %v1164_v38  ;;  %v79_v32 = vld [vmem:[%s4935_s2 + $0x88] sm:$0xff]  ;;  %v2099_v38 = vld [vmem:[%s4936_s3 + $0xf8] sm:$0xff] }
 0x215   :  { %v1157_v41 = vmul.f32 %v3767_v35, %v1125_v63  ;;  %3473 = vmatpush3.xpose.msra.mxu1 %v72_v34 }
 0x216   :  { %v1179_v42 = vmul.f32 %v3765_v31, %v1167_v37  ;;  %3440 = vmatmul.mubr.f32.vlgmr.msra.gmra.mxu0 %v1186_v36  ;;  %3484 = vmatprep.subr.mxu1 %v3842_v2  ;;  %v1188_v50 = vmul.f32 %v4153_v19, %v1176_v44  ;;  %v85_v31 = vld [vmem:[%s4935_s2 + $0xb8] sm:$0xff]  ;;  %v78_v36 = vld [vmem:[%s4935_s2 + $0x80] sm:$0xff] }
 0x217   :  { %v4239_v43 = vpop.eup %3768  ;;  %3450 = vmatpush3.xpose.msra.mxu0 %v67_v40  ;;  %3453 = vmatprep.mubr.msk.f32.mxu0 %vm3843_vm1, %v3842_v2  ;;  %v1169_v45 = vsub.f32 2.0, %v1157_v41 }
 0x218   :  { %v1191_v14 = vmul.f32 %v4155_v20, %v1179_v42  ;;  %3451 = vmatprep.subr.mxu0 %v3842_v2  ;;  %v1126_v49 = vsel %vm1029_vm6, %v4239_v43, 0.0 }
 0x219   :  { %1127 = vadd.xlane.f32.xlu0 %v1126_v49  ;;  %v1181_v51 = vmul.f32 %v3767_v35, %v1169_v45  ;;  %v2098_v45 = vld [vmem:[%s4936_s3 + $0xf0] sm:$0xff] }
 0x21a   :  { %3475 = vmatmul.mubr.f32.vlgmr.msra.gmra.mxu1 %v1191_v14 }
 0x21b   :  { %3452 = vmatpush3.xpose.msra.mxu0 %v66_v47  ;;  %3485 = vmatpush3.xpose.msra.mxu1 %v77_v48  ;;  %v1193_v19 = vmul.f32 %v4166_v25, %v1181_v51  ;;  %v81_v25 = vld [vmem:[%s4935_s2 + $0x98] sm:$0xff]  ;;  %v82_v47 = vld [vmem:[%s4935_s2 + $0xa0] sm:$0xff]  ;;  %v2097_v48 = vld [vmem:[%s4936_s3 + $0xe8] sm:$0xff] }
 0x21c   :  { %v4253_v20 = vpop.eup %3770  ;;  %3486 = vmatprep.subr.mxu1 %v3842_v2  ;;  %3488 = vmatprep.mubr.msk.f32.mxu1 %vm3843_vm1, %v3842_v2  ;;  %v2096_v51 = vld [vmem:[%s4936_s3 + $0xe0] sm:$0xff] }
 0x21d   :  { %v1132_v53 = vsel %vm1029_vm6, %v4253_v20, 0.0  ;;  %3463 = vmatprep.subr.mxu0 %v3842_v2 }
 0x21e   :  { %3454 = vmatmul.mubr.f32.vlgmr.msra.gmra.mxu0 %v1188_v50  ;;  %1133 = vadd.xlane.f32.xlu1 %v1132_v53  ;;  %v2083_v50 = vld [vmem:[%s4936_s3 + $0x78] sm:$0xff]  ;;  %v2081_v53 = vld [vmem:[%s4936_s3 + $0x68] sm:$0xff] }
 0x21f   :  { %3487 = vmatpush3.xpose.msra.mxu1 %v76_v52  ;;  %3467 = vmatprep.mubr.msk.f32.mxu0 %vm3843_vm1, %v3842_v2  ;;  %v2095_v52 = vld [vmem:[%s4936_s3 + $0xd8] sm:$0xff] }
 0x220   :  { %3498 = vmatprep.subr.mxu1 %v3842_v2  ;;  %3464 = vmatpush3.xpose.msra.mxu0 %v71_v54  ;;  %v2094_v54 = vld [vmem:[%s4936_s3 + $0xd0] sm:$0xff] }
 0x221   :  { %3465 = vmatprep.subr.mxu0 %v3842_v2 }
 0x222   :  { %3489 = vmatmul.mubr.f32.vlgmr.msra.gmra.mxu1 %v1193_v19 }
 0x223   :  { %3502 = vmatprep.mubr.msk.f32.mxu1 %vm3843_vm1, %v3842_v2  ;;  %3499 = vmatpush3.xpose.msra.mxu1 %v81_v25  ;;  %v2080_v25 = vld [vmem:[%s4936_s3 + $0x60] sm:$0xff] }
 0x224   :  { %3466 = vmatpush3.xpose.msra.mxu0 %v70_v55  ;;  %3500 = vmatprep.subr.mxu1 %v3842_v2 }
 0x225   :  { %3477 = vmatprep.subr.mxu0 %v3842_v2 }
 0x227   :  { %3501 = vmatpush3.xpose.msra.mxu1 %v80_v56  ;;  %v2093_v56 = vld [vmem:[%s4936_s3 + $0xc8] sm:$0xff] }
 0x228   :  { %3512 = vmatprep.subr.mxu1 %v3842_v2 }
 0x292   :  { %v1116_v57 = vpop.xlane.xlu0 %1115 }
 0x293   :  { %3772 = vrcp.f32 %v1116_v57 }
 0x296   :  { %v1122_v60 = vpop.xlane.xlu0 %1121 }
 0x297   :  { %3774 = vrcp.f32 %v1122_v60  ;;  %v1131_v61 = vpop.xlane.xlu1 %1130 }
 0x298   :  { %3776 = vrcp.f32 %v1131_v61 }
 0x29b   :  { %v1137_v62 = vpop.xlane.xlu1 %1136 }
 0x29c   :  { %3778 = vrcp.f32 %v1137_v62 }
 0x2a0   :  { %v3773_v63 = vpop.eup %3772 }
 0x2a1   :  { %v1154_v0 = vmul.f32 %v3773_v63, %v1116_v57  ;;  %v2079_v57 = vld [vmem:[%s4936_s3 + $0x58] sm:$0xff] }
 0x2a2   :  { %v1128_v39 = vpop.xlane.xlu0 %1127 }
 0x2a3   :  { %v1166_v4 = vsub.f32 2.0, %v1154_v0  ;;  %3780 = vrcp.f32 %v1128_v39  ;;  %v2091_v0 = vld [vmem:[%s4936_s3 + $0xb8] sm:$0xff] }
 0x2a4   :  { %v3775_v7 = vpop.eup %3774 }
 0x2a5   :  { %v3777_v8 = vpop.eup %3776  ;;  %v1178_v9 = vmul.f32 %v3773_v63, %v1166_v4  ;;  %v1156_v58 = vmul.f32 %v3775_v7, %v1122_v60  ;;  %v2078_v63 = vld [vmem:[%s4936_s3 + $0x50] sm:$0xff]  ;;  %v2077_v4 = vld [vmem:[%s4936_s3 + $0x48] sm:$0xff] }
 0x2a6   :  { %v1159_v11 = vmul.f32 %v3777_v8, %v1131_v61  ;;  %v2092_v61 = vld [vmem:[%s4936_s3 + $0xc0] sm:$0xff] }
 0x2a7   :  { %v1190_v13 = vmul.f32 %v4200_v3, %v1178_v9  ;;  %v1168_v17 = vsub.f32 2.0, %v1156_v58  ;;  %v1134_v18 = vpop.xlane.xlu1 %1133  ;;  %v74_v3 = vld [vmem:[%s4935_s2 + $0x60] sm:$0xff] }
 0x2a8   :  { %v1171_v22 = vsub.f32 2.0, %v1159_v11  ;;  %3782 = vrcp.f32 %v1134_v18  ;;  %v2076_v58 = vld [vmem:[%s4936_s3 + $0x40] sm:$0xff] }
 0x2a9   :  { %v3779_v23 = vpop.eup %3778  ;;  %3468 = vmatmul.mubr.f32.vlgmr.msra.gmra.mxu0 %v1190_v13  ;;  %v1180_v27 = vmul.f32 %v3775_v7, %v1168_v17  ;;  %v2089_v13 = vld [vmem:[%s4936_s3 + $0xa8] sm:$0xff] }
 0x2aa   :  { %v1183_v24 = vmul.f32 %v3777_v8, %v1171_v22  ;;  %v1161_v26 = vmul.f32 %v3779_v23, %v1137_v62  ;;  %3478 = vmatpush3.xpose.msra.mxu0 %v75_v21  ;;  %3481 = vmatprep.mubr.msk.f32.mxu0 %vm3843_vm1, %v3842_v2  ;;  %v2090_v8 = vld [vmem:[%s4936_s3 + $0xb0] sm:$0xff]  ;;  %v2088_v22 = vld [vmem:[%s4936_s3 + $0xa0] sm:$0xff] }
 0x2ab   :  { %3479 = vmatprep.subr.mxu0 %v3842_v2  ;;  %v1192_v6 = vmul.f32 %v4210_v12, %v1180_v27  ;;  %v2087_v27 = vld [vmem:[%s4936_s3 + $0x98] sm:$0xff] }
 0x2ac   :  { %v1195_v29 = vmul.f32 %v4213_v15, %v1183_v24  ;;  %v1173_v30 = vsub.f32 2.0, %v1161_v26  ;;  %v84_v15 = vld [vmem:[%s4935_s2 + $0xb0] sm:$0xff] }
 0x2ad   :  { %v2074_v24 = vld [vmem:[%s4936_s3 + $0x30] sm:$0xff] }
 0x2ae   :  { %3480 = vmatpush3.xpose.msra.mxu0 %v74_v3  ;;  %3503 = vmatmul.mubr.f32.vlgmr.msra.gmra.mxu1 %v1195_v29  ;;  %v1185_v34 = vmul.f32 %v3779_v23, %v1173_v30  ;;  %v2073_v3 = vld [vmem:[%s4936_s3 + $0x28] sm:$0xff]  ;;  %v2086_v29 = vld [vmem:[%s4936_s3 + $0x90] sm:$0xff]  ;;  %v2072_v30 = vld [vmem:[%s4936_s3 + $0x20] sm:$0xff] }
 0x2af   :  { %3513 = vmatpush3.xpose.msra.mxu1 %v85_v31  ;;  %3491 = vmatprep.subr.mxu0 %v3842_v2  ;;  %v2085_v31 = vld [vmem:[%s4936_s3 + $0x88] sm:$0xff] }
 0x2b0   :  { %v3781_v33 = vpop.eup %3780  ;;  %3514 = vmatprep.subr.mxu1 %v3842_v2  ;;  %3516 = vmatprep.mubr.msk.f32.mxu1 %vm3843_vm1, %v3842_v2  ;;  %v1197_v37 = vmul.f32 %v4224_v28, %v1185_v34  ;;  %v83_v28 = vld [vmem:[%s4935_s2 + $0xa8] sm:$0xff] }
 0x2b1   :  { %v1158_v35 = vmul.f32 %v3781_v33, %v1128_v39  ;;  %3482 = vmatmul.mubr.f32.vlgmr.msra.gmra.mxu0 %v1192_v6  ;;  %v2071_v6 = vld [vmem:[%s4936_s3 + $0x18] sm:$0xff]  ;;  %v2069_v34 = vld [vmem:[%s4936_s3 + $0x8] sm:$0xff] }
 0x2b2   :  { %3492 = vmatpush3.xpose.msra.mxu0 %v79_v32  ;;  %3495 = vmatprep.mubr.msk.f32.mxu0 %vm3843_vm1, %v3842_v2  ;;  %v2084_v32 = vld [vmem:[%s4936_s3 + $0x80] sm:$0xff] }
 0x2b3   :  { %v1170_v12 = vsub.f32 2.0, %v1158_v35  ;;  %3515 = vmatpush3.xpose.msra.mxu1 %v84_v15  ;;  %3493 = vmatprep.subr.mxu0 %v3842_v2  ;;  %v2068_v15 = vld [vmem:[%s4936_s3] sm:$0xff] }
 0x2b4   :  { %3554 = vmatprep.subr.mxu1 %v3842_v2 }
 0x2b5   :  { %v3783_v40 = vpop.eup %3782  ;;  %v1182_v41 = vmul.f32 %v3781_v33, %v1170_v12  ;;  %v2070_v33 = vld [vmem:[%s4936_s3 + $0x10] sm:$0xff]  ;;  %v2115_v12 = vld [vmem:[%s4936_s3 + $0x178] sm:$0xff] }
 0x2b6   :  { %v1160_v42 = vmul.f32 %v3783_v40, %v1134_v18  ;;  %3517 = vmatmul.mubr.f32.vlgmr.msra.gmra.mxu1 %v1197_v37  ;;  %3494 = vmatpush3.xpose.msra.mxu0 %v78_v36  ;;  %v2075_v18 = vld [vmem:[%s4936_s3 + $0x38] sm:$0xff]  ;;  %v2114_v37 = vld [vmem:[%s4936_s3 + $0x170] sm:$0xff] }
 0x2b7   :  { %v1194_v14 = vmul.f32 %v4239_v43, %v1182_v41  ;;  %3505 = vmatprep.subr.mxu0 %v3842_v2  ;;  %3555 = vmatpush3.xpose.msk.msra.mxu1 %vm2206_vm15, %v2099_v38  ;;  %v2113_v41 = vld [vmem:[%s4936_s3 + $0x168] sm:$0xff] }
 0x2b8   :  { %v1172_v44 = vsub.f32 2.0, %v1160_v42  ;;  %3556 = vmatprep.subr.mxu1 %v3842_v2  ;;  %3586 = vmatprep.mubr.msk.f32.mxu1 %vm3843_vm1, %v3842_v2 }
 0x2b9   :  { %3496 = vmatmul.mubr.f32.vlgmr.msra.gmra.mxu0 %v1194_v14  ;;  %v2130_v14 = vld [vmem:[%s4936_s3 + $0x1f0] sm:$0xff] }
 0x2ba   :  { %3506 = vmatpush3.xpose.msra.mxu0 %v83_v28  ;;  %3509 = vmatprep.mubr.msk.f32.mxu0 %vm3843_vm1, %v3842_v2  ;;  %v1184_v43 = vmul.f32 %v3783_v40, %v1172_v44  ;;  %v2131_v40 = vld [vmem:[%s4936_s3 + $0x1f8] sm:$0xff]  ;;  %v2112_v28 = vld [vmem:[%s4936_s3 + $0x160] sm:$0xff]  ;;  %v2129_v44 = vld [vmem:[%s4936_s3 + $0x1e8] sm:$0xff] }
 0x2bb   :  { %3507 = vmatprep.subr.mxu0 %v3842_v2  ;;  %3557 = vmatpush3.xpose.msk.msra.mxu1 %vm2206_vm15, %v2098_v45  ;;  %v2111_v45 = vld [vmem:[%s4936_s3 + $0x158] sm:$0xff] }
 0x2bc   :  { %3558 = vmatprep.subr.mxu1 %v3842_v2  ;;  %v1196_v49 = vmul.f32 %v4253_v20, %v1184_v43  ;;  %v2082_v20 = vld [vmem:[%s4936_s3 + $0x70] sm:$0xff]  ;;  %v2128_v43 = vld [vmem:[%s4936_s3 + $0x1e0] sm:$0xff] }
 0x2be   :  { %3508 = vmatpush3.xpose.msra.mxu0 %v82_v47  ;;  %v2110_v47 = vld [vmem:[%s4936_s3 + $0x150] sm:$0xff] }
 0x2bf   :  { %3519 = vmatprep.subr.mxu0 %v3842_v2  ;;  %3559 = vmatpush3.xpose.msk.msra.mxu1 %vm2206_vm15, %v2097_v48  ;;  %v2127_v48 = vld [vmem:[%s4936_s3 + $0x1d8] sm:$0xff] }
 0x2c0   :  { %3560 = vmatprep.subr.mxu1 %v3842_v2 }
 0x2c1   :  { %3510 = vmatmul.mubr.f32.vlgmr.msra.gmra.mxu0 %v1196_v49  ;;  %v2109_v49 = vld [vmem:[%s4936_s3 + $0x148] sm:$0xff] }
 0x2c2   :  { %3520 = vmatpush3.xpose.msk.msra.mxu0 %vm2206_vm15, %v2083_v50  ;;  %3551 = vmatprep.mubr.msk.f32.mxu0 %vm3843_vm1, %v3842_v2  ;;  %v2126_v50 = vld [vmem:[%s4936_s3 + $0x1d0] sm:$0xff] }
 0x2c3   :  { %3521 = vmatprep.subr.mxu0 %v3842_v2  ;;  %3561 = vmatpush3.xpose.msk.msra.mxu1 %vm2206_vm15, %v2096_v51  ;;  %v2108_v51 = vld [vmem:[%s4936_s3 + $0x140] sm:$0xff] }
 0x2c4   :  { %3562 = vmatprep.subr.mxu1 %v3842_v2 }
 0x2c6   :  { %3522 = vmatpush3.xpose.msk.msra.mxu0 %vm2206_vm15, %v2082_v20  ;;  %v2125_v20 = vld [vmem:[%s4936_s3 + $0x1c8] sm:$0xff] }
 0x2c7   :  { %3523 = vmatprep.subr.mxu0 %v3842_v2  ;;  %3563 = vmatpush3.xpose.msk.msra.mxu1 %vm2206_vm15, %v2095_v52  ;;  %v2107_v52 = vld [vmem:[%s4936_s3 + $0x138] sm:$0xff] }
 0x2c8   :  { %v1334_v19 = vpop.f32.mrf.mxu1  ;;  %3564 = vmatprep.subr.mxu1 %v3842_v2 }
 0x2c9   :  { %2044 = vrot.lane.b32.xlu0 %v1334_v19, %s3845_s17  ;;  %v2106_v19 = vld [vmem:[%s4936_s3 + $0x130] sm:$0xff] }
 0x2ca   :  { %v3448_v55 = vpop.f32.mrf.mxu1  ;;  %3524 = vmatpush3.xpose.msk.msra.mxu0 %vm2206_vm15, %v2081_v53  ;;  %v2124_v53 = vld [vmem:[%s4936_s3 + $0x1c0] sm:$0xff] }
 0x2cb   :  { %3525 = vmatprep.subr.mxu0 %v3842_v2  ;;  %3565 = vmatpush3.xpose.msk.msra.mxu1 %vm2206_vm15, %v2094_v54  ;;  %v2123_v54 = vld [vmem:[%s4936_s3 + $0x1b8] sm:$0xff]  ;;  %v2105_v55 = vld [vmem:[%s4936_s3 + $0x128] sm:$0xff] }
 0x2cc   :  { %3566 = vmatprep.subr.mxu1 %v3842_v2 }
 0x2ce   :  { %3526 = vmatpush3.xpose.msk.msra.mxu0 %vm2206_vm15, %v2080_v25  ;;  %v2122_v25 = vld [vmem:[%s4936_s3 + $0x1b0] sm:$0xff] }
 0x2cf   :  { %3527 = vmatprep.subr.mxu0 %v3842_v2  ;;  %3567 = vmatpush3.xpose.msk.msra.mxu1 %vm2206_vm15, %v2093_v56  ;;  %v2104_v56 = vld [vmem:[%s4936_s3 + $0x120] sm:$0xff] }
 0x2d0   :  { %v1474_v60 = vpop.f32.mrf.mxu1  ;;  %3568 = vmatprep.subr.mxu1 %v3842_v2 }
 0x2d1   :  { %2046 = vrot.lane.b32.xlu1 %v1474_v60, %s3845_s17 }
 0x2d2   :  { %v3462_v62 = vpop.f32.mrf.mxu1  ;;  %3528 = vmatpush3.xpose.msk.msra.mxu0 %vm2206_vm15, %v2079_v57 }
 0x2d3   :  { %3529 = vmatprep.subr.mxu0 %v3842_v2  ;;  %3569 = vmatpush3.xpose.msk.msra.mxu1 %vm2206_vm15, %v2092_v61  ;;  %v2121_v61 = vld [vmem:[%s4936_s3 + $0x1a8] sm:$0xff]  ;;  %v2103_v62 = vld [vmem:[%s4936_s3 + $0x118] sm:$0xff] }
 0x2d4   :  { %3570 = vmatprep.subr.mxu1 %v3842_v2 }
 0x2d6   :  { %v4410_v39 = vpop.f32.mrf.mxu0  ;;  %3530 = vmatpush3.xpose.msk.msra.mxu0 %vm2206_vm15, %v2078_v63 }
 0x2d7   :  { %3531 = vmatprep.subr.mxu0 %v3842_v2  ;;  %3571 = vmatpush3.xpose.msk.msra.mxu1 %vm2206_vm15, %v2091_v0  ;;  %v2120_v0 = vld [vmem:[%s4936_s3 + $0x1a0] sm:$0xff] }
 0x2d8   :  { %v3441_v7 = vpop.f32.mrf.mxu0  ;;  %3572 = vmatprep.subr.mxu1 %v3842_v2 }
 0x2da   :  { %v1614_v9 = vpop.f32.mrf.mxu1  ;;  %3532 = vmatpush3.xpose.msk.msra.mxu0 %vm2206_vm15, %v2077_v4 }
 0x2db   :  { %2048 = vrot.lane.b32.xlu1 %v1614_v9, %s3845_s17  ;;  %3533 = vmatprep.subr.mxu0 %v3842_v2  ;;  %v2119_v9 = vld [vmem:[%s4936_s3 + $0x198] sm:$0xff] }
 0x2dc   :  { %v3476_v11 = vpop.f32.mrf.mxu1  ;;  %3573 = vmatpush3.xpose.msk.msra.mxu1 %vm2206_vm15, %v2090_v8 }
 0x2dd   :  { %3574 = vmatprep.subr.mxu1 %v3842_v2 }
 0x2de   :  { %v1404_v17 = vpop.f32.mrf.mxu0  ;;  %3534 = vmatpush3.xpose.msk.msra.mxu0 %vm2206_vm15, %v2076_v58  ;;  %v2101_v58 = vld [vmem:[%s4936_s3 + $0x108] sm:$0xff] }
 0x2df   :  { %3535 = vmatprep.subr.mxu0 %v3842_v2 }
 0x2e0   :  { %v3455_v21 = vpop.f32.mrf.mxu0  ;;  %3575 = vmatpush3.xpose.msk.msra.mxu1 %vm2206_vm15, %v2089_v13  ;;  %v2118_v13 = vld [vmem:[%s4936_s3 + $0x190] sm:$0xff] }
 0x2e1   :  { %3576 = vmatprep.subr.mxu1 %v3842_v2 }
 0x2e2   :  { %v1754_v23 = vpop.f32.mrf.mxu1  ;;  %3536 = vmatpush3.xpose.msk.msra.mxu0 %vm2206_vm15, %v2075_v18 }
 0x2e3   :  { %2050 = vrot.lane.b32.xlu1 %v1754_v23, %s3845_s17  ;;  %3537 = vmatprep.subr.mxu0 %v3842_v2 }
 0x2e4   :  { %v3490_v26 = vpop.f32.mrf.mxu1  ;;  %3577 = vmatpush3.xpose.msk.msra.mxu1 %vm2206_vm15, %v2088_v22 }
 0x2e5   :  { %3578 = vmatprep.subr.mxu1 %v3842_v2  ;;  %v2147_v26 = vld [vmem:[%s4936_s3 + $0x278] sm:$0xff] }
 0x2e6   :  { %3538 = vmatpush3.xpose.msk.msra.mxu0 %vm2206_vm15, %v2074_v24  ;;  %v2117_v24 = vld [vmem:[%s4936_s3 + $0x188] sm:$0xff] }
 0x2e7   :  { %3539 = vmatprep.subr.mxu0 %v3842_v2 }
 0x2e8   :  { %3579 = vmatpush3.xpose.msk.msra.mxu1 %vm2206_vm15, %v2087_v27 }
 0x2e9   :  { %3580 = vmatprep.subr.mxu1 %v3842_v2 }
 0x2ea   :  { %3540 = vmatpush3.xpose.msk.msra.mxu0 %vm2206_vm15, %v2073_v3  ;;  %v2116_v3 = vld [vmem:[%s4936_s3 + $0x180] sm:$0xff] }
 0x2eb   :  { %3541 = vmatprep.subr.mxu0 %v3842_v2 }
 0x2ec   :  { %3581 = vmatpush3.xpose.msk.msra.mxu1 %vm2206_vm15, %v2086_v29  ;;  %v2146_v29 = vld [vmem:[%s4936_s3 + $0x270] sm:$0xff] }
 0x2ed   :  { %3582 = vmatprep.subr.mxu1 %v3842_v2 }
 0x2ee   :  { %3542 = vmatpush3.xpose.msk.msra.mxu0 %vm2206_vm15, %v2072_v30 }
 0x2ef   :  { %3543 = vmatprep.subr.mxu0 %v3842_v2 }
 0x2f0   :  { %3583 = vmatpush3.xpose.msk.msra.mxu1 %vm2206_vm15, %v2085_v31 }
 0x2f1   :  { %3584 = vmatprep.subr.mxu1 %v3842_v2 }
 0x2f2   :  { %3544 = vmatpush3.xpose.msk.msra.mxu0 %vm2206_vm15, %v2071_v6 }
 0x2f3   :  { %3545 = vmatprep.subr.mxu0 %v3842_v2 }
 0x2f4   :  { %3585 = vmatpush3.xpose.msk.msra.mxu1 %vm2206_vm15, %v2084_v32  ;;  %v2163_v32 = vld [vmem:[%s4936_s3 + $0x2f8] sm:$0xff] }
 0x2f5   :  { %3624 = vmatprep.subr.mxu1 %v3842_v2 }
 0x2f6   :  { %3546 = vmatpush3.xpose.msk.msra.mxu0 %vm2206_vm15, %v2070_v33  ;;  %v2145_v33 = vld [vmem:[%s4936_s3 + $0x268] sm:$0xff] }
 0x2f7   :  { %3547 = vmatprep.subr.mxu0 %v3842_v2 }
 0x2fa   :  { %3548 = vmatpush3.xpose.msk.msra.mxu0 %vm2206_vm15, %v2069_v34 }
 0x2fb   :  { %3549 = vmatprep.subr.mxu0 %v3842_v2 }
 0x2fe   :  { %3550 = vmatpush3.xpose.msk.msra.mxu0 %vm2206_vm15, %v2068_v15  ;;  %v2162_v15 = vld [vmem:[%s4936_s3 + $0x2f0] sm:$0xff] }
 0x2ff   :  { %3589 = vmatprep.subr.mxu0 %v3842_v2 }
 0x33b   :  { %v2045_v35 = vpop.permute.xlu0 %2044 }
 0x33c   :  { %v2062_v36 = vsel %vm86_vm0, %v4410_v39, %v2045_v35  ;;  %v2102_v39 = vld [vmem:[%s4936_s3 + $0x110] sm:$0xff]  ;;  %v2144_v35 = vld [vmem:[%s4936_s3 + $0x260] sm:$0xff] }
 0x33d   :  { %3552 = vmatmul.mubr.msk.f32.vlgmr.msra.gmra.mxu0 %vm2206_vm15, %v2062_v36  ;;  %v2143_v36 = vld [vmem:[%s4936_s3 + $0x258] sm:$0xff] }
 0x33e   :  { %3590 = vmatpush3.xpose.msk.msra.mxu0 %vm2206_vm15, %v2115_v12  ;;  %3621 = vmatprep.mubr.msk.f32.mxu0 %vm3843_vm1, %v3842_v2  ;;  %v2161_v12 = vld [vmem:[%s4936_s3 + $0x2e8] sm:$0xff] }
 0x33f   :  { %3591 = vmatprep.subr.mxu0 %v3842_v2 }
 0x342   :  { %3592 = vmatpush3.xpose.msk.msra.mxu0 %vm2206_vm15, %v2114_v37  ;;  %v2160_v37 = vld [vmem:[%s4936_s3 + $0x2e0] sm:$0xff] }
 0x343   :  { %v2047_v38 = vpop.permute.xlu1 %2046  ;;  %3593 = vmatprep.subr.mxu0 %v3842_v2 }
 0x344   :  { %v2063_v42 = vsel %vm86_vm0, %v1404_v17, %v2047_v38  ;;  %v2100_v17 = vld [vmem:[%s4936_s3 + $0x100] sm:$0xff]  ;;  %v2142_v38 = vld [vmem:[%s4936_s3 + $0x250] sm:$0xff] }
 0x345   :  { %3587 = vmatmul.mubr.msk.f32.vlgmr.msra.gmra.mxu1 %vm2206_vm15, %v2063_v42  ;;  %v2158_v42 = vld [vmem:[%s4936_s3 + $0x2d0] sm:$0xff] }
 0x346   :  { %3625 = vmatpush3.xpose.msk.msra.mxu1 %vm2206_vm15, %v2131_v40  ;;  %3594 = vmatpush3.xpose.msk.msra.mxu0 %vm2206_vm15, %v2113_v41  ;;  %v2159_v40 = vld [vmem:[%s4936_s3 + $0x2d8] sm:$0xff]  ;;  %v2141_v41 = vld [vmem:[%s4936_s3 + $0x248] sm:$0xff] }
 0x347   :  { %3626 = vmatprep.subr.mxu1 %v3842_v2  ;;  %3595 = vmatprep.subr.mxu0 %v3842_v2 }
 0x348   :  { %3656 = vmatprep.mubr.msk.f32.mxu1 %vm3843_vm1, %v3842_v2 }
 0x34a   :  { %3627 = vmatpush3.xpose.msk.msra.mxu1 %vm2206_vm15, %v2130_v14  ;;  %3596 = vmatpush3.xpose.msk.msra.mxu0 %vm2206_vm15, %v2112_v28  ;;  %v2140_v14 = vld [vmem:[%s4936_s3 + $0x240] sm:$0xff]  ;;  %v2157_v28 = vld [vmem:[%s4936_s3 + $0x2c8] sm:$0xff] }
 0x34b   :  { %3628 = vmatprep.subr.mxu1 %v3842_v2  ;;  %3597 = vmatprep.subr.mxu0 %v3842_v2 }
 0x34d   :  { %v2049_v22 = vpop.permute.xlu1 %2048 }
 0x34e   :  { %3629 = vmatpush3.xpose.msk.msra.mxu1 %vm2206_vm15, %v2129_v44  ;;  %3598 = vmatpush3.xpose.msk.msra.mxu0 %vm2206_vm15, %v2111_v45  ;;  %v2139_v44 = vld [vmem:[%s4936_s3 + $0x238] sm:$0xff]  ;;  %v2156_v45 = vld [vmem:[%s4936_s3 + $0x2c0] sm:$0xff] }
 0x34f   :  { %3630 = vmatprep.subr.mxu1 %v3842_v2  ;;  %3599 = vmatprep.subr.mxu0 %v3842_v2 }
 0x352   :  { %3631 = vmatpush3.xpose.msk.msra.mxu1 %vm2206_vm15, %v2128_v43  ;;  %3600 = vmatpush3.xpose.msk.msra.mxu0 %vm2206_vm15, %v2110_v47  ;;  %v2138_v43 = vld [vmem:[%s4936_s3 + $0x230] sm:$0xff]  ;;  %v2155_v47 = vld [vmem:[%s4936_s3 + $0x2b8] sm:$0xff] }
 0x353   :  { %3632 = vmatprep.subr.mxu1 %v3842_v2  ;;  %3601 = vmatprep.subr.mxu0 %v3842_v2 }
 0x355   :  { %v2051_v31 = vpop.permute.xlu1 %2050 }
 0x356   :  { %3633 = vmatpush3.xpose.msk.msra.mxu1 %vm2206_vm15, %v2127_v48  ;;  %3602 = vmatpush3.xpose.msk.msra.mxu0 %vm2206_vm15, %v2109_v49  ;;  %v2137_v48 = vld [vmem:[%s4936_s3 + $0x228] sm:$0xff]  ;;  %v2154_v49 = vld [vmem:[%s4936_s3 + $0x2b0] sm:$0xff] }
 0x357   :  { %3634 = vmatprep.subr.mxu1 %v3842_v2  ;;  %3603 = vmatprep.subr.mxu0 %v3842_v2 }
 0x35a   :  { %3635 = vmatpush3.xpose.msk.msra.mxu1 %vm2206_vm15, %v2126_v50  ;;  %3604 = vmatpush3.xpose.msk.msra.mxu0 %vm2206_vm15, %v2108_v51  ;;  %v2136_v50 = vld [vmem:[%s4936_s3 + $0x220] sm:$0xff]  ;;  %v2153_v51 = vld [vmem:[%s4936_s3 + $0x2a8] sm:$0xff] }
 0x35b   :  { %3636 = vmatprep.subr.mxu1 %v3842_v2  ;;  %3605 = vmatprep.subr.mxu0 %v3842_v2 }
 0x35e   :  { %3637 = vmatpush3.xpose.msk.msra.mxu1 %vm2206_vm15, %v2125_v20  ;;  %3606 = vmatpush3.xpose.msk.msra.mxu0 %vm2206_vm15, %v2107_v52  ;;  %v2135_v20 = vld [vmem:[%s4936_s3 + $0x218] sm:$0xff]  ;;  %v2152_v52 = vld [vmem:[%s4936_s3 + $0x2a0] sm:$0xff] }
 0x35f   :  { %3638 = vmatprep.subr.mxu1 %v3842_v2  ;;  %3607 = vmatprep.subr.mxu0 %v3842_v2 }
 0x362   :  { %3639 = vmatpush3.xpose.msk.msra.mxu1 %vm2206_vm15, %v2124_v53  ;;  %3608 = vmatpush3.xpose.msk.msra.mxu0 %vm2206_vm15, %v2106_v19  ;;  %v2134_v53 = vld [vmem:[%s4936_s3 + $0x210] sm:$0xff]  ;;  %v2151_v19 = vld [vmem:[%s4936_s3 + $0x298] sm:$0xff] }
 0x363   :  { %3640 = vmatprep.subr.mxu1 %v3842_v2  ;;  %3609 = vmatprep.subr.mxu0 %v3842_v2 }
 0x366   :  { %3641 = vmatpush3.xpose.msk.msra.mxu1 %vm2206_vm15, %v2123_v54  ;;  %3610 = vmatpush3.xpose.msk.msra.mxu0 %vm2206_vm15, %v2105_v55  ;;  %v2133_v54 = vld [vmem:[%s4936_s3 + $0x208] sm:$0xff]  ;;  %v2150_v55 = vld [vmem:[%s4936_s3 + $0x290] sm:$0xff] }
 0x367   :  { %3642 = vmatprep.subr.mxu1 %v3842_v2  ;;  %3611 = vmatprep.subr.mxu0 %v3842_v2 }
 0x369   :  { %v1544_v57 = vpop.f32.mrf.mxu0 }
 0x36a   :  { %3643 = vmatpush3.xpose.msk.msra.mxu1 %vm2206_vm15, %v2122_v25  ;;  %3612 = vmatpush3.xpose.msk.msra.mxu0 %vm2206_vm15, %v2104_v56  ;;  %v2064_v27 = vsel %vm86_vm0, %v1544_v57, %v2049_v22  ;;  %v2132_v25 = vld [vmem:[%s4936_s3 + $0x200] sm:$0xff]  ;;  %v2149_v56 = vld [vmem:[%s4936_s3 + $0x288] sm:$0xff] }
 0x36b   :  { %v3469_v60 = vpop.f32.mrf.mxu0  ;;  %3644 = vmatprep.subr.mxu1 %v3842_v2  ;;  %3613 = vmatprep.subr.mxu0 %v3842_v2  ;;  %v2148_v57 = vld [vmem:[%s4936_s3 + $0x280] sm:$0xff] }
 0x36e   :  { %3645 = vmatpush3.xpose.msk.msra.mxu1 %vm2206_vm15, %v2121_v61  ;;  %v1894_v63 = vpop.f32.mrf.mxu1  ;;  %3614 = vmatpush3.xpose.msk.msra.mxu0 %vm2206_vm15, %v2103_v62 }
 0x36f   :  { %2052 = vrot.lane.b32.xlu0 %v1894_v63, %s3845_s17  ;;  %3646 = vmatprep.subr.mxu1 %v3842_v2 }
 0x370   :  { %v3504_v4 = vpop.f32.mrf.mxu1  ;;  %3615 = vmatprep.subr.mxu0 %v3842_v2 }
 0x371   :  { %v1684_v7 = vpop.f32.mrf.mxu0 }
 0x372   :  { %3647 = vmatpush3.xpose.msk.msra.mxu1 %vm2206_vm15, %v2120_v0  ;;  %3616 = vmatpush3.xpose.msk.msra.mxu0 %vm2206_vm15, %v2102_v39  ;;  %v2065_v34 = vsel %vm86_vm0, %v1684_v7, %v2051_v31 }
 0x373   :  { %v3483_v8 = vpop.f32.mrf.mxu0  ;;  %3648 = vmatprep.subr.mxu1 %v3842_v2  ;;  %3617 = vmatprep.subr.mxu0 %v3842_v2 }
 0x374   :  { %v3070_v8 = vld [vmem:[%s4937_s4 + $0x1] ss:$0 sm:$0xff] }
 0x376   :  { %v2034_v11 = vpop.f32.mrf.mxu1  ;;  %3649 = vmatpush3.xpose.msk.msra.mxu1 %vm2206_vm15, %v2119_v9  ;;  %3618 = vmatpush3.xpose.msk.msra.mxu0 %vm2206_vm15, %v2101_v58 }
 0x377   :  { %2054 = vrot.lane.b32.xlu1 %v2034_v11, %s3845_s17  ;;  %3650 = vmatprep.subr.mxu1 %v3842_v2 }
 0x378   :  { %v3518_v18 = vpop.f32.mrf.mxu1  ;;  %3619 = vmatprep.subr.mxu0 %v3842_v2 }
 0x379   :  { %v4660_v21 = vpop.f32.mrf.mxu0 }
 0x37a   :  { %3651 = vmatpush3.xpose.msk.msra.mxu1 %vm2206_vm15, %v2118_v13  ;;  %3620 = vmatpush3.xpose.msk.msra.mxu0 %vm2206_vm15, %v2100_v17 }
 0x37b   :  { %v3497_v23 = vpop.f32.mrf.mxu0  ;;  %3652 = vmatprep.subr.mxu1 %v3842_v2  ;;  %3659 = vmatprep.subr.mxu0 %v3842_v2 }
 0x37d   :  { %3622 = vmatmul.mubr.msk.f32.vlgmr.msra.gmra.mxu0 %vm2206_vm15, %v2064_v27 }
 0x37e   :  { %3653 = vmatpush3.xpose.msk.msra.mxu1 %vm2206_vm15, %v2117_v24  ;;  %3660 = vmatpush3.xpose.msk.msra.mxu0 %vm2206_vm15, %v2147_v26 }
 0x37f   :  { %3654 = vmatprep.subr.mxu1 %v3842_v2  ;;  %3661 = vmatprep.subr.mxu0 %v3842_v2 }
 0x380   :  { %3691 = vmatprep.mubr.msk.f32.mxu0 %vm3843_vm1, %v3842_v2 }
 0x381   :  { %v4686_v30 = vpop.f32.mrf.mxu0 }
 0x382   :  { %3655 = vmatpush3.xpose.msk.msra.mxu1 %vm2206_vm15, %v2116_v3  ;;  %3662 = vmatpush3.xpose.msk.msra.mxu0 %vm2206_vm15, %v2146_v29 }
 0x383   :  { %v3511_v6 = vpop.f32.mrf.mxu0  ;;  %3694 = vmatprep.subr.mxu1 %v3842_v2  ;;  %3663 = vmatprep.subr.mxu0 %v3842_v2 }
 0x384   :  { %v3072_v6 = vld [vmem:[%s4937_s4 + $0x3] ss:$0 sm:$0xff] }
 0x385   :  { %3657 = vmatmul.mubr.msk.f32.vlgmr.msra.gmra.mxu1 %vm2206_vm15, %v2065_v34 }
 0x386   :  { %3695 = vmatpush3.xpose.msk.msra.mxu1 %vm2206_vm15, %v2163_v32  ;;  %3664 = vmatpush3.xpose.msk.msra.mxu0 %vm2206_vm15, %v2145_v33 }
 0x387   :  { %3696 = vmatprep.subr.mxu1 %v3842_v2  ;;  %3665 = vmatprep.subr.mxu0 %v3842_v2 }
 0x388   :  { %3726 = vmatprep.mubr.msk.f32.mxu1 %vm3843_vm1, %v3842_v2 }
 0x38a   :  { %3697 = vmatpush3.xpose.msk.msra.mxu1 %vm2206_vm15, %v2162_v15  ;;  %3666 = vmatpush3.xpose.msk.msra.mxu0 %vm2206_vm15, %v2144_v35 }
 0x38b   :  { %3698 = vmatprep.subr.mxu1 %v3842_v2  ;;  %3667 = vmatprep.subr.mxu0 %v3842_v2 }
 0x38e   :  { %3699 = vmatpush3.xpose.msk.msra.mxu1 %vm2206_vm15, %v2161_v12  ;;  %3668 = vmatpush3.xpose.msk.msra.mxu0 %vm2206_vm15, %v2143_v36 }
 0x38f   :  { %3700 = vmatprep.subr.mxu1 %v3842_v2  ;;  %3669 = vmatprep.subr.mxu0 %v3842_v2 }
 0x392   :  { %3701 = vmatpush3.xpose.msk.msra.mxu1 %vm2206_vm15, %v2160_v37  ;;  %3670 = vmatpush3.xpose.msk.msra.mxu0 %vm2206_vm15, %v2142_v38 }
 0x393   :  { %3702 = vmatprep.subr.mxu1 %v3842_v2  ;;  %3671 = vmatprep.subr.mxu0 %v3842_v2 }
 0x396   :  { %3703 = vmatpush3.xpose.msk.msra.mxu1 %vm2206_vm15, %v2159_v40  ;;  %3672 = vmatpush3.xpose.msk.msra.mxu0 %vm2206_vm15, %v2141_v41 }
 0x397   :  { %3704 = vmatprep.subr.mxu1 %v3842_v2  ;;  %3673 = vmatprep.subr.mxu0 %v3842_v2 }
 0x39a   :  { %3705 = vmatpush3.xpose.msk.msra.mxu1 %vm2206_vm15, %v2158_v42  ;;  %3674 = vmatpush3.xpose.msk.msra.mxu0 %vm2206_vm15, %v2140_v14 }
 0x39b   :  { %3706 = vmatprep.subr.mxu1 %v3842_v2  ;;  %3675 = vmatprep.subr.mxu0 %v3842_v2 }
 0x39e   :  { %3707 = vmatpush3.xpose.msk.msra.mxu1 %vm2206_vm15, %v2157_v28  ;;  %3676 = vmatpush3.xpose.msk.msra.mxu0 %vm2206_vm15, %v2139_v44 }
 0x39f   :  { %3708 = vmatprep.subr.mxu1 %v3842_v2  ;;  %3677 = vmatprep.subr.mxu0 %v3842_v2 }
 0x3a2   :  { %3709 = vmatpush3.xpose.msk.msra.mxu1 %vm2206_vm15, %v2156_v45  ;;  %3678 = vmatpush3.xpose.msk.msra.mxu0 %vm2206_vm15, %v2138_v43 }
 0x3a3   :  { %3710 = vmatprep.subr.mxu1 %v3842_v2  ;;  %3679 = vmatprep.subr.mxu0 %v3842_v2 }
 0x3a6   :  { %3711 = vmatpush3.xpose.msk.msra.mxu1 %vm2206_vm15, %v2155_v47  ;;  %3680 = vmatpush3.xpose.msk.msra.mxu0 %vm2206_vm15, %v2137_v48  ;;  %v3074_v47 = vld [vmem:[%s4937_s4 + $0x5] ss:$0 sm:$0xff] }
 0x3a7   :  { %3712 = vmatprep.subr.mxu1 %v3842_v2  ;;  %3681 = vmatprep.subr.mxu0 %v3842_v2 }
 0x3aa   :  { %3713 = vmatpush3.xpose.msk.msra.mxu1 %vm2206_vm15, %v2154_v49  ;;  %3682 = vmatpush3.xpose.msk.msra.mxu0 %vm2206_vm15, %v2136_v50 }
 0x3ab   :  { %3714 = vmatprep.subr.mxu1 %v3842_v2  ;;  %3683 = vmatprep.subr.mxu0 %v3842_v2 }
 0x3ae   :  { %3715 = vmatpush3.xpose.msk.msra.mxu1 %vm2206_vm15, %v2153_v51  ;;  %3684 = vmatpush3.xpose.msk.msra.mxu0 %vm2206_vm15, %v2135_v20 }
 0x3af   :  { %3716 = vmatprep.subr.mxu1 %v3842_v2  ;;  %3685 = vmatprep.subr.mxu0 %v3842_v2 }
 0x3b2   :  { %3717 = vmatpush3.xpose.msk.msra.mxu1 %vm2206_vm15, %v2152_v52  ;;  %3686 = vmatpush3.xpose.msk.msra.mxu0 %vm2206_vm15, %v2134_v53 }
 0x3b3   :  { %3718 = vmatprep.subr.mxu1 %v3842_v2  ;;  %3687 = vmatprep.subr.mxu0 %v3842_v2 }
 0x3b6   :  { %3719 = vmatpush3.xpose.msk.msra.mxu1 %vm2206_vm15, %v2151_v19  ;;  %3688 = vmatpush3.xpose.msk.msra.mxu0 %vm2206_vm15, %v2133_v54 }
 0x3b7   :  { %3720 = vmatprep.subr.mxu1 %v3842_v2  ;;  %3689 = vmatprep.subr.mxu0 %v3842_v2 }
 0x3ba   :  { %3721 = vmatpush3.xpose.msk.msra.mxu1 %vm2206_vm15, %v2150_v55  ;;  %3690 = vmatpush3.xpose.msk.msra.mxu0 %vm2206_vm15, %v2132_v25 }
 0x3bb   :  { %3722 = vmatprep.subr.mxu1 %v3842_v2 }
 0x3be   :  { %3723 = vmatpush3.xpose.msk.msra.mxu1 %vm2206_vm15, %v2149_v56 }
 0x3bf   :  { %3724 = vmatprep.subr.mxu1 %v3842_v2  ;;  %v3069_v2 = vld [vmem:[%s4937_s4] ss:$0 sm:$0xff]  ;;  %s3846_s4 = smov [#allocation2]  }
 0x3c0   :  { %s3046_s10 = sshll.u32 %s3846_s4, 4  ;;  %s3047_s10 = int_to_ptr.vmem [resolvable:$true] %s3046_s10 }
 0x3c1   :  { %s3820_s11 = scalar_lea.vmem %s3047_s10, 384  ;;  %p3825_p1 = scmp.lt.s32.totalorder %s3047_s10, %s3047_s10 }
 0x3c2   :  { %3725 = vmatpush3.xpose.msk.msra.mxu1 %vm2206_vm15, %v2148_v57  ;;  %p3821_p0 = scmp.ne.s32.totalorder %s3047_s10, %s3820_s11  ;;  %p3826_p2 = scmp.lt.s32.totalorder %s3820_s11, %s3820_s11 }
 0x3c4   :  { %p3827_p3 = por %p3826_p2, %p3825_p1 }
 0x3c6   :  { %p3828_p4 = pnand %p3827_p3, %p3821_p0 }
 0x3e1   :  { %v2053_v60 = vpop.permute.xlu0 %2052 }
 0x3e2   :  { %v2066_v61 = vsel %vm86_vm0, %v4660_v21, %v2053_v60 }
 0x3e3   :  { %3692 = vmatmul.mubr.msk.f32.vlgmr.msra.gmra.mxu0 %vm2206_vm15, %v2066_v61 }
 0x3e9   :  { %v2055_v62 = vpop.permute.xlu1 %2054 }
 0x3ea   :  { %v2067_v63 = vsel %vm86_vm0, %v4686_v30, %v2055_v62 }
 0x3eb   :  { %3727 = vmatmul.mubr.msk.f32.vlgmr.msra.gmra.mxu1 %vm2206_vm15, %v2067_v63 }
 0x3fd   :  { %v2324_v0 = vpop.f32.mrf.mxu0 }
 0x3fe   :  { %v2325_v39 = vadd.f32 %v3069_v2, %v2324_v0 }
 0x3ff   :  { %v3553_v4 = vpop.f32.mrf.mxu0 }
 0x400   :  { %v2933_v7 = vmul.f32 0.17677669, %v2325_v39 }
 0x402   :  { %3784 = vtanh.f32 %v2933_v7 }
 0x405   :  { %v2445_v9 = vpop.f32.mrf.mxu1 }
 0x406   :  { %v2446_v58 = vadd.f32 %v3070_v8, %v2445_v9 }
 0x407   :  { %v3588_v11 = vpop.f32.mrf.mxu1 }
 0x408   :  { %v2934_v13 = vmul.f32 0.17677669, %v2446_v58 }
 0x40a   :  { %3786 = vtanh.f32 %v2934_v13 }
 0x40f   :  { %v3785_v17 = vpop.eup %3784 }
 0x410   :  { %v2945_v18 = vmul.f32 10.0, %v3785_v17 }
 0x412   :  { %v4858_v21 = vsel %vm4069_vm5, -3.4028235e+38, %v2945_v18 }
 0x413   :  { %v2957_v22 = vsel %vm1029_vm6, %v4858_v21, -inf }
 0x414   :  { %2958 = vmax.xlane.f32.xlu0 %v2957_v22 }
 0x417   :  { %v3787_v23 = vpop.eup %3786 }
 0x418   :  { %v2946_v24 = vmul.f32 10.0, %v3787_v23 }
 0x41a   :  { %v4864_v26 = vsel %vm4083_vm8, -3.4028235e+38, %v2946_v24 }
 0x41b   :  { %v2960_v27 = vsel %vm1029_vm6, %v4864_v26, -inf }
 0x41c   :  { %2961 = vmax.xlane.f32.xlu1 %v2960_v27 }
 0x43d   :  { %v2566_v3 = vpop.f32.mrf.mxu0 }
 0x43e   :  { %v2567_v29 = vadd.f32 %v3071_v46, %v2566_v3 }
 0x43f   :  { %v3623_v30 = vpop.f32.mrf.mxu0 }
 0x440   :  { %v2935_v31 = vmul.f32 0.17677669, %v2567_v29 }
 0x442   :  { %3788 = vtanh.f32 %v2935_v31 }
 0x445   :  { %v2687_v59 = vpop.f32.mrf.mxu1 }
 0x446   :  { %v2688_v32 = vadd.f32 %v3072_v6, %v2687_v59 }
 0x447   :  { %v3658_v33 = vpop.f32.mrf.mxu1 }
 0x448   :  { %v2936_v34 = vmul.f32 0.17677669, %v2688_v32 }
 0x44a   :  { %3790 = vtanh.f32 %v2936_v34 }
 0x44f   :  { %v3789_v15 = vpop.eup %3788 }
 0x450   :  { %v2947_v35 = vmul.f32 10.0, %v3789_v15 }
 0x452   :  { %v4876_v12 = vsel %vm4091_vm9, -3.4028235e+38, %v2947_v35 }
 0x453   :  { %v2963_v36 = vsel %vm1029_vm6, %v4876_v12, -inf }
 0x454   :  { %2964 = vmax.xlane.f32.xlu0 %v2963_v36 }
 0x457   :  { %v3791_v37 = vpop.eup %3790 }
 0x458   :  { %v2948_v38 = vmul.f32 10.0, %v3791_v37 }
 0x45a   :  { %v4882_v40 = vsel %vm4101_vm10, -3.4028235e+38, %v2948_v38 }
 0x45b   :  { %v2966_v41 = vsel %vm1029_vm6, %v4882_v40, -inf }
 0x45c   :  { %2967 = vmax.xlane.f32.xlu0 %v2966_v41 }
 0x49d   :  { %v4889_v42 = vpop.xlane.xlu0 %2958 }
 0x49e   :  { %v2975_v44 = vsub.f32 %v4858_v21, %v4889_v42 }
 0x4a0   :  { %v2981_v16 = vmul.f32 1.442695, %v2975_v44 }
 0x4a3   :  { %v2808_v14 = vpop.f32.mrf.mxu0 }
 0x4a4   :  { %v2809_v28 = vadd.f32 %v3073_v5, %v2808_v14 }
 0x4a5   :  { %v3693_v45 = vpop.f32.mrf.mxu0  ;;  %v4896_v48 = vpop.xlane.xlu1 %2961 }
 0x4a6   :  { %v2937_v43 = vmul.f32 0.17677669, %v2809_v28  ;;  %v2976_v51 = vsub.f32 %v4864_v26, %v4896_v48 }
 0x4a8   :  { %3792 = vtanh.f32 %v2937_v43  ;;  %v2983_v53 = vmul.f32 1.442695, %v2976_v51 }
 0x4a9   :  { %3794 = vpow2.f32 %v2981_v16 }
 0x4ab   :  { %v2929_v49 = vpop.f32.mrf.mxu1 }
 0x4ac   :  { %v2930_v50 = vadd.f32 %v3074_v47, %v2929_v49 }
 0x4ad   :  { %v3728_v20 = vpop.f32.mrf.mxu1 }
 0x4ae   :  { %v2938_v52 = vmul.f32 0.17677669, %v2930_v50 }
 0x4b0   :  { %3796 = vtanh.f32 %v2938_v52 }
 0x4b1   :  { %3798 = vpow2.f32 %v2983_v53 }
 0x4b5   :  { %v3793_v19 = vpop.eup %3792 }
 0x4b6   :  { %v2949_v54 = vmul.f32 10.0, %v3793_v19  ;;  %v3795_v56 = vpop.eup %3794 }
 0x4b7   :  { %v2993_v60 = vsel %vm1029_vm6, %v3795_v56, 0.0 }
 0x4b8   :  { %v4902_v55 = vsel %vm4126_vm13, -3.4028235e+38, %v2949_v54 }
 0x4b9   :  { %v2969_v25 = vsel %vm1029_vm6, %v4902_v55, -inf }
 0x4ba   :  { %2970 = vmax.xlane.f32.xlu0 %v2969_v25 }
 0x4bd   :  { %v3797_v57 = vpop.eup %3796 }
 0x4be   :  { %2994 = vadd.xlane.f32.xlu0 %v2993_v60  ;;  %v2950_v61 = vmul.f32 10.0, %v3797_v57  ;;  %v3799_v1 = vpop.eup %3798 }
 0x4bf   :  { %v2996_v2 = vsel %vm1029_vm6, %v3799_v1, 0.0 }
 0x4c0   :  { %v4909_v62 = vsel %vm4140_vm14, -3.4028235e+38, %v2950_v61 }
 0x4c1   :  { %v2972_v63 = vsel %vm1029_vm6, %v4909_v62, -inf }
 0x4c2   :  { %2973 = vmax.xlane.f32.xlu1 %v2972_v63 }
 0x4c6   :  { %2997 = vadd.xlane.f32.xlu1 %v2996_v2 }
 0x4dd   :  { %v2965_v0 = vpop.xlane.xlu0 %2964 }
 0x4de   :  { %v2977_v39 = vsub.f32 %v4876_v12, %v2965_v0 }
 0x4e0   :  { %v2985_v4 = vmul.f32 1.442695, %v2977_v39 }
 0x4e2   :  { %3800 = vpow2.f32 %v2985_v4 }
 0x4e5   :  { %v2968_v7 = vpop.xlane.xlu0 %2967 }
 0x4e6   :  { %v2978_v8 = vsub.f32 %v4882_v40, %v2968_v7 }
 0x4e8   :  { %v2987_v9 = vmul.f32 1.442695, %v2978_v8 }
 0x4ea   :  { %3802 = vpow2.f32 %v2987_v9 }
 0x4ef   :  { %v3801_v10 = vpop.eup %3800 }
 0x4f0   :  { %v2999_v58 = vsel %vm1029_vm6, %v3801_v10, 0.0 }
 0x4f1   :  { %3000 = vadd.xlane.f32.xlu0 %v2999_v58 }
 0x4f7   :  { %v3803_v11 = vpop.eup %3802 }
 0x4f8   :  { %v3002_v13 = vsel %vm1029_vm6, %v3803_v11, 0.0 }
 0x4f9   :  { %3003 = vadd.xlane.f32.xlu1 %v3002_v13 }
 0x543   :  { %v2971_v17 = vpop.xlane.xlu0 %2970 }
 0x544   :  { %v2979_v18 = vsub.f32 %v4902_v55, %v2971_v17 }
 0x546   :  { %v2989_v22 = vmul.f32 1.442695, %v2979_v18 }
 0x547   :  { %v2995_v23 = vpop.xlane.xlu0 %2994 }
 0x548   :  { %3804 = vpow2.f32 %v2989_v22 }
 0x549   :  { %3806 = vlog2.f32 %v2995_v23 }
 0x54b   :  { %v2974_v24 = vpop.xlane.xlu1 %2973 }
 0x54c   :  { %v2980_v27 = vsub.f32 %v4909_v62, %v2974_v24 }
 0x54e   :  { %v2991_v46 = vmul.f32 1.442695, %v2980_v27 }
 0x54f   :  { %v2998_v3 = vpop.xlane.xlu1 %2997 }
 0x550   :  { %3808 = vpow2.f32 %v2991_v46 }
 0x551   :  { %3810 = vlog2.f32 %v2998_v3 }
 0x555   :  { %v3805_v29 = vpop.eup %3804 }
 0x556   :  { %v3807_v30 = vpop.eup %3806  ;;  %v3005_v31 = vsel %vm1029_vm6, %v3805_v29, 0.0 }
 0x557   :  { %v3012_v6 = vmul.f32 0.6931472, %v3807_v30  ;;  %3006 = vadd.xlane.f32.xlu0 %v3005_v31 }
 0x559   :  { %v3023_v59 = vadd.f32 %v3012_v6, %v4889_v42 }
 0x55b   :  { %v3029_v32 = vsub.f32 %v4858_v21, %v3023_v59 }
 0x55d   :  { %v3809_v33 = vpop.eup %3808  ;;  %3035 = vst [vmem:[#allocation2] sm:$0xf] %v3029_v32 }
 0x55e   :  { %v3811_v34 = vpop.eup %3810  ;;  %v3008_v15 = vsel %vm1029_vm6, %v3809_v33, 0.0 }
 0x55f   :  { %v3014_v35 = vmul.f32 0.6931472, %v3811_v34  ;;  %3009 = vadd.xlane.f32.xlu1 %v3008_v15 }
 0x561   :  { %v3024_v36 = vadd.f32 %v3014_v35, %v4896_v48 }
 0x563   :  { %v3030_v37 = vsub.f32 %v4864_v26, %v3024_v36 }
 0x565   :  { %3036 = vst [vmem:[#allocation2 + $0x4] sm:$0xf] %v3030_v37 }
 0x57a   :  { %v3001_v38 = vpop.xlane.xlu0 %3000 }
 0x57b   :  { %3812 = vlog2.f32 %v3001_v38 }
 0x582   :  { %v3004_v41 = vpop.xlane.xlu1 %3003 }
 0x583   :  { %3814 = vlog2.f32 %v3004_v41 }
 0x588   :  { %v3813_v5 = vpop.eup %3812 }
 0x589   :  { %v3016_v42 = vmul.f32 0.6931472, %v3813_v5 }
 0x58b   :  { %v3025_v14 = vadd.f32 %v3016_v42, %v2965_v0 }
 0x58d   :  { %v3031_v21 = vsub.f32 %v4876_v12, %v3025_v14 }
 0x58f   :  { %3037 = vst [vmem:[#allocation2 + $0x8] sm:$0xf] %v3031_v21 }
 0x590   :  { %v3815_v28 = vpop.eup %3814 }
 0x591   :  { %v3018_v44 = vmul.f32 0.6931472, %v3815_v28 }
 0x593   :  { %v3026_v45 = vadd.f32 %v3018_v44, %v2968_v7 }
 0x595   :  { %v3032_v43 = vsub.f32 %v4882_v40, %v3026_v45 }
 0x597   :  { %3038 = vst [vmem:[#allocation2 + $0xc] sm:$0xf] %v3032_v43 }
 0x5e0   :  { %v3007_v16 = vpop.xlane.xlu0 %3006 }
 0x5e1   :  { %3816 = vlog2.f32 %v3007_v16 }
 0x5e8   :  { %v3010_v26 = vpop.xlane.xlu1 %3009 }
 0x5e9   :  { %3818 = vlog2.f32 %v3010_v26 }
 0x5ee   :  { %v3817_v47 = vpop.eup %3816 }
 0x5ef   :  { %v3020_v48 = vmul.f32 0.6931472, %v3817_v47 }
 0x5f1   :  { %v3027_v49 = vadd.f32 %v3020_v48, %v2971_v17 }
 0x5f3   :  { %v3033_v50 = vsub.f32 %v4902_v55, %v3027_v49 }
 0x5f5   :  { %3039 = vst [vmem:[#allocation2 + $0x10] sm:$0xf] %v3033_v50 }
 0x5f6   :  { %v3819_v51 = vpop.eup %3818 }
 0x5f7   :  { %v3022_v20 = vmul.f32 0.6931472, %v3819_v51 }
 0x5f9   :  { %v3028_v12 = vadd.f32 %v3022_v20, %v2974_v24 }
 0x5fb   :  { %v3034_v52 = vsub.f32 %v4909_v62, %v3028_v12 }
 0x5fd   :  { %3040 = vst [vmem:[#allocation2 + $0x14] sm:$0xf] %v3034_v52 }
 0x5fe   :  { %3831 = shalt.err (!%p3828_p4)
}
 0x5ff   :  { %s3847_s12 = smov 64   ;;  %s3848_s13 = smov 4  }
 0x600   :  { %3052 = dma.vmem_to_hbm [thread:$0]  %s3047_s10, 384, %s4939_s6, [#allocation3], %s3847_s12, %s3847_s12, %s3848_s13  }
 0x601   :  { %3840 = dma.done.wait [#allocation3], 384  }
 0x602   :  { %3841 = vsyncadd [#allocation3], 4294966912 }
 0x603   :  { %3056 = vsyncpa [#allocation3], 1 }

</bundles_post_ra>
